<compile_context>
chip_gen: v6e
topology: v6e:2x2x1
jax: 0.10.0
libtpu: 0.0.40
codegen_flags: <defaults>
</compile_context>

<pallas_src>
import functools

import jax
import jax.numpy as jnp
from jax import lax
from jax.experimental import pallas as pl
from jax.experimental.pallas import tpu as pltpu

TAPS = ((0, 0), (0, 1), (1, 0), (1, 1))      # 2x2 kernel offsets, torch flatten order
MXU_DTYPE = jnp.bfloat16                     # matmul-input dtype (f32 accumulate)


# ------------------------------ fused kernel ----------------------------------
def _fused_value_net_kernel(p1_ref, w1_ref, b1_ref, w2_ref, b2_ref,
                            w3_ref, b3_ref, w4_ref, b4_ref, o_ref, *, tb):
    rows = 16 * tb                                    # rows ordered (spatial, batch)
    p1 = p1_ref[...].reshape(rows, 32)                # free leading-dim merge

    # conv1 for all 4 conv2 taps at once: block-diagonal (32,512) weights ->
    # lanes [128t:128t+128] hold conv1 at tap t's positions.  One K=32 matmul,
    # one fused bias+ReLU epilogue.
    h1 = jnp.dot(p1, w1_ref[...], preferred_element_type=jnp.float32)   # (rows,512)
    h1 = jnp.maximum(h1 + b1_ref[...], 0.0)

    # conv2: single K=512 contraction over (tap, in-channel).
    h2 = jnp.dot(h1.astype(MXU_DTYPE), w2_ref[...],
                 preferred_element_type=jnp.float32)                    # (rows,128)
    h2 = jnp.maximum(h2 + b2_ref[...], 0.0)                             # f32

    # fc1: HWC flatten as 4 accumulated K=512 matmuls.  Group g lane-concats the
    # contiguous sublane blocks of spatial positions 4g..4g+3 (w3 pre-permuted to
    # the matching (spatial, cin, out) order).
    h3 = None
    for g in range(4):
        blk = jnp.concatenate(
            [h2[(4 * g + u) * tb:(4 * g + u + 1) * tb, :] for u in range(4)],
            axis=1).astype(MXU_DTYPE)                                   # (tb,512)
        part = jnp.dot(blk, w3_ref[g], preferred_element_type=jnp.float32)
        h3 = part if h3 is None else h3 + part
    h3 = jnp.maximum(h3 + b3_ref[...], 0.0)                             # (tb,256)

    # fc2: output padded 1 -> 128 lanes (unmasked stores); wrapper slices col 0.
    h4 = jnp.dot(h3.astype(MXU_DTYPE), w4_ref[...],
                 preferred_element_type=jnp.float32)                    # (tb,128)
    o_ref[...] = (h4 + b4_ref[...]).astype(o_ref.dtype)


# --------------------------- parameter handling --------------------------------
def init_params():
    keys = jax.random.split(jax.random.PRNGKey(42), 8)
    scale = 0.05
    return {
        "conv1_w": scale * jax.random.normal(keys[0], (128, 1, 2, 2), jnp.float32),
        "conv1_b": scale * jax.random.normal(keys[1], (128,), jnp.float32),
        "conv2_w": scale * jax.random.normal(keys[2], (128, 128, 2, 2), jnp.float32),
        "conv2_b": scale * jax.random.normal(keys[3], (128,), jnp.float32),
        # stored (in, out) so reference forward is x @ W + b (== torch x @ W.T + b)
        "fc1_w": scale * jax.random.normal(keys[4], (128 * 4 * 4, 256), jnp.float32),
        "fc1_b": scale * jax.random.normal(keys[5], (256,), jnp.float32),
        "fc2_w": scale * jax.random.normal(keys[6], (256, 1), jnp.float32),
        "fc2_b": scale * jax.random.normal(keys[7], (1,), jnp.float32),
    }


def prepare_params(params):
    """One-time repack of torch-convention params into kernel-ready layout."""
    # conv1 -> block-diagonal (32, 512): rows [8t:8t+4] (conv1 kernel taps, torch
    # row-major order) feed output lanes [128t:128t+128] for conv2 tap t.
    w1 = params["conv1_w"].reshape(128, 4).T                       # (4,128)
    w1_bd = jnp.zeros((32, 512), jnp.float32)
    for t in range(4):
        w1_bd = w1_bd.at[8 * t:8 * t + 4, 128 * t:128 * (t + 1)].set(w1)
    b1 = jnp.tile(params["conv1_b"], 4).reshape(1, 512)            # per-tap bias copy
    # conv2 -> (512, 128): row = tap*128 + cin (TAPS order), col = cout.
    w2 = jnp.transpose(params["conv2_w"], (2, 3, 1, 0)).reshape(512, 128)
    # fc1 -> (4, 512, 256): [group, local_spatial*128 + cin, out] in HWC flatten order.
    w3 = params["fc1_w"].reshape(128, 16, 256).transpose(1, 0, 2)  # (16,128,256)
    w3 = w3.reshape(4, 512, 256)
    w4 = jnp.pad(params["fc2_w"], ((0, 0), (0, 127)))              # (256,128) N-pad
    return {
        "w1": w1_bd.astype(MXU_DTYPE),
        "b1": b1.astype(jnp.float32),
        "w2": w2.astype(MXU_DTYPE),
        "b2": params["conv2_b"].reshape(1, 128).astype(jnp.float32),
        "w3": w3.astype(MXU_DTYPE),
        "b3": params["fc1_b"].reshape(1, 256).astype(jnp.float32),
        "w4": w4.astype(MXU_DTYPE),
        "b4": jnp.broadcast_to(
            params["fc2_b"].reshape(1, 1).astype(jnp.float32), (1, 128)),
    }


# ------------------------------ forward ----------------------------------------
def _choose_tile(batch):
    """Batch-adaptive tile: multiple of 8, <=128 rows of batch per step, and
    >=2 grid steps whenever batch > 8 (v7x megacore sharding)."""
    b8 = (batch + 7) // 8 * 8
    if b8 <= 8:
        return 8, 1
    n_steps = max(2, (b8 + 127) // 128)
    tb = ((b8 + n_steps - 1) // n_steps + 7) // 8 * 8
    return tb, n_steps


def _conv_patches(x, b_pad):
    """x: (B,1,4,4) -> (16, b_pad, 32) bf16. Row (s, b) holds, for conv2-output
    position s=h*4+w of sample b, the four conv1 2x2 input patches needed by
    conv2's four taps, lane-packed as [tap: 4 values + 4 zero pad] * 4."""
    B = x.shape[0]
    xp = jnp.pad(x[:, 0].astype(jnp.float32),
                 ((0, b_pad - B), (1, 1), (1, 1)))                  # (b_pad,6,6)
    # conv1 input patches at every 5x5 conv1-output position.
    pat5 = jnp.stack([xp[:, ki:ki + 5, kj:kj + 5] for (ki, kj) in TAPS], axis=-1)
    pat5 = jnp.pad(pat5, ((0, 0), (0, 0), (0, 0), (0, 4)))          # (b_pad,5,5,8)
    # conv2 tap (i,j) at output (h,w) consumes conv1 position (h+i, w+j).
    taps = [pat5[:, i:i + 4, j:j + 4, :] for (i, j) in TAPS]        # 4x(b_pad,4,4,8)
    p = jnp.stack(taps, axis=3).reshape(b_pad, 16, 32)              # (b, s, tap*8+k)
    return jnp.transpose(p, (1, 0, 2)).astype(MXU_DTYPE)            # (s, b, 32)


@jax.jit
def value_network_forward(prep, x):
    B = x.shape[0]
    tb, n_steps = _choose_tile(B)
    b_pad = tb * n_steps
    p1 = _conv_patches(x, b_pad)
    out = pl.pallas_call(
        functools.partial(_fused_value_net_kernel, tb=tb),
        out_shape=jax.ShapeDtypeStruct((b_pad, 128), jnp.float32),
        grid=(n_steps,),
        in_specs=[
            pl.BlockSpec((16, tb, 32), lambda i: (0, i, 0)),        # conv patches
            pl.BlockSpec((32, 512), lambda i: (0, 0)),              # w1 block-diag
            pl.BlockSpec((1, 512), lambda i: (0, 0)),               # b1 (tiled x4)
            pl.BlockSpec((512, 128), lambda i: (0, 0)),             # w2 (K=512)
            pl.BlockSpec((1, 128), lambda i: (0, 0)),               # b2
            pl.BlockSpec((4, 512, 256), lambda i: (0, 0, 0)),       # fc1 (K groups)
            pl.BlockSpec((1, 256), lambda i: (0, 0)),               # b3
            pl.BlockSpec((256, 128), lambda i: (0, 0)),             # fc2 (N padded)
            pl.BlockSpec((1, 128), lambda i: (0, 0)),               # b4 (broadcast)
        ],
        out_specs=pl.BlockSpec((tb, 128), lambda i: (i, 0)),
        compiler_params=pltpu.CompilerParams(
            dimension_semantics=("parallel",),                      # 2nd TC on v7x
            vmem_limit_bytes=32 * 1024 * 1024),                     # > v5e 16MiB default
    )(p1, prep["w1"], prep["b1"], prep["w2"], prep["b2"],
      prep["w3"], prep["b3"], prep["w4"], prep["b4"])
    return out[:B, :1]


# --------------------------- references ----------------------------------------
def _reference_forward_f32(params, x):
    dn = ("NCHW", "OIHW", "NCHW")
    h = lax.conv_general_dilated(x, params["conv1_w"], (1, 1), [(1, 1), (1, 1)],
                                 dimension_numbers=dn)
    h = jax.nn.relu(h + params["conv1_b"][None, :, None, None])
    h = lax.conv_general_dilated(h, params["conv2_w"], (1, 1), [(0, 0), (0, 0)],
                                 dimension_numbers=dn)
    h = jax.nn.relu(h + params["conv2_b"][None, :, None, None])
    h = h.reshape(x.shape[0], -1)
    h = jax.nn.relu(h @ params["fc1_w"] + params["fc1_b"])
    return h @ params["fc2_w"] + params["fc2_b"]


def _reference_forward_bf16(params, x):
    """Same network with matmul/conv inputs cast to bf16 + f32 accumulation —
    mirrors the kernel's numerics."""
    dn = ("NCHW", "OIHW", "NCHW")

    def conv(a, w, pad):
        return lax.conv_general_dilated(
            a.astype(MXU_DTYPE), w.astype(MXU_DTYPE), (1, 1),
            [(pad, pad), (pad, pad)], dimension_numbers=dn,
            preferred_element_type=jnp.float32)

    h = jax.nn.relu(conv(x, params["conv1_w"], 1)
                    + params["conv1_b"][None, :, None, None])
    h = jax.nn.relu(conv(h, params["conv2_w"], 0)
                    + params["conv2_b"][None, :, None, None])
    h = h.reshape(x.shape[0], -1)
    h = jax.nn.relu(jnp.dot(h.astype(MXU_DTYPE), params["fc1_w"].astype(MXU_DTYPE),
                            preferred_element_type=jnp.float32) + params["fc1_b"])
    return (jnp.dot(h.astype(MXU_DTYPE), params["fc2_w"].astype(MXU_DTYPE),
                    preferred_element_type=jnp.float32) + params["fc2_b"])


if __name__ == "__main__":
    params = init_params()
    prep = prepare_params(params)

    # Small inference-style batch (single grid step, TB=8).
    x = jax.random.normal(jax.random.PRNGKey(0), (2, 1, 4, 4), dtype=jnp.float32)
    out = jax.block_until_ready(value_network_forward(prep, x))
    assert out.shape == (2, 1), out.shape
    ref_bf16 = jax.block_until_ready(_reference_forward_bf16(params, x))
    assert jnp.allclose(out, ref_bf16, atol=1e-3, rtol=1e-3), (out, ref_bf16)
    ref_f32 = jax.block_until_ready(_reference_forward_f32(params, x))
    assert jnp.allclose(out, ref_f32, atol=1e-2, rtol=5e-2), (out, ref_f32)

    # Larger batch exercising the multi-step grid + batch padding path.
    xb = jax.random.normal(jax.random.PRNGKey(1), (40, 1, 4, 4), dtype=jnp.float32)
    outb = jax.block_until_ready(value_network_forward(prep, xb))
    assert outb.shape == (40, 1), outb.shape
    refb = jax.block_until_ready(_reference_forward_bf16(params, xb))
    assert jnp.allclose(outb, refb, atol=1e-3, rtol=1e-3)

    print("KERNEL_OK")
</pallas_src>

<mosaic_0001>
module attributes {stable_mosaic.version = 11 : i64} {
  func.func @_fused_value_net_kernel(%arg0: i32, %arg1: memref<16x8x32xbf16, #tpu.memory_space<vmem>>, %arg2: memref<32x512xbf16, #tpu.memory_space<vmem>>, %arg3: memref<1x512xf32, #tpu.memory_space<vmem>>, %arg4: memref<512x128xbf16, #tpu.memory_space<vmem>>, %arg5: memref<1x128xf32, #tpu.memory_space<vmem>>, %arg6: memref<4x512x256xbf16, #tpu.memory_space<vmem>>, %arg7: memref<1x256xf32, #tpu.memory_space<vmem>>, %arg8: memref<256x128xbf16, #tpu.memory_space<vmem>>, %arg9: memref<1x128xf32, #tpu.memory_space<vmem>>, %arg10: memref<8x128xf32, #tpu.memory_space<vmem>>) attributes {dimension_semantics = [#tpu.dimension_semantics<parallel>], iteration_bounds = array<i64: 1>, scalar_prefetch = 0 : i64, scratch_operands = 0 : i64, tpu.core_type = #tpu.core_type<tc>, window_params = [{transform_indices = @transform_0, window_bounds = array<i64: 16, 8, 32>}, {pipeline_mode = #tpu.pipeline_mode<synchronous>, transform_indices = @transform_1, window_bounds = array<i64: 32, 512>}, {pipeline_mode = #tpu.pipeline_mode<synchronous>, transform_indices = @transform_2, window_bounds = array<i64: 1, 512>}, {pipeline_mode = #tpu.pipeline_mode<synchronous>, transform_indices = @transform_3, window_bounds = array<i64: 512, 128>}, {pipeline_mode = #tpu.pipeline_mode<synchronous>, transform_indices = @transform_4, window_bounds = array<i64: 1, 128>}, {pipeline_mode = #tpu.pipeline_mode<synchronous>, transform_indices = @transform_5, window_bounds = array<i64: 4, 512, 256>}, {pipeline_mode = #tpu.pipeline_mode<synchronous>, transform_indices = @transform_6, window_bounds = array<i64: 1, 256>}, {pipeline_mode = #tpu.pipeline_mode<synchronous>, transform_indices = @transform_7, window_bounds = array<i64: 256, 128>}, {pipeline_mode = #tpu.pipeline_mode<synchronous>, transform_indices = @transform_8, window_bounds = array<i64: 1, 128>}, {transform_indices = @transform_9, window_bounds = array<i64: 8, 128>}]} {
    %c0 = arith.constant 0 : index
    %c0_0 = arith.constant 0 : index
    %c0_1 = arith.constant 0 : index
    %0 = vector.load %arg1[%c0, %c0_0, %c0_1] : memref<16x8x32xbf16, #tpu.memory_space<vmem>>, vector<16x8x32xbf16>
    %1 = vector.shape_cast %0 : vector<16x8x32xbf16> to vector<128x32xbf16>
    %c0_2 = arith.constant 0 : index
    %c0_3 = arith.constant 0 : index
    %2 = vector.load %arg2[%c0_2, %c0_3] : memref<32x512xbf16, #tpu.memory_space<vmem>>, vector<32x512xbf16>
    %cst = arith.constant dense<0.000000e+00> : vector<128x512xf32>
    %3 = tpu.matmul %1, %2, %cst {dimension_numbers = #tpu.dot_dimension_numbers<[1], [0], [0], [1], [0, 0, 1, 1], [], []>} : vector<128x32xbf16>, vector<32x512xbf16>, vector<128x512xf32> -> vector<128x512xf32>
    %c0_4 = arith.constant 0 : index
    %c0_5 = arith.constant 0 : index
    %4 = vector.load %arg3[%c0_4, %c0_5] : memref<1x512xf32, #tpu.memory_space<vmem>>, vector<1x512xf32>
    %5 = vector.broadcast %4 : vector<1x512xf32> to vector<128x512xf32>
    %6 = arith.addf %3, %5 : vector<128x512xf32>
    %cst_6 = arith.constant 0.000000e+00 : f32
    %7 = vector.broadcast %cst_6 : f32 to vector<128x512xf32>
    %8 = arith.maximumf %6, %7 : vector<128x512xf32>
    %9 = arith.truncf %8 : vector<128x512xf32> to vector<128x512xbf16>
    %c0_7 = arith.constant 0 : index
    %c0_8 = arith.constant 0 : index
    %10 = vector.load %arg4[%c0_7, %c0_8] : memref<512x128xbf16, #tpu.memory_space<vmem>>, vector<512x128xbf16>
    %cst_9 = arith.constant dense<0.000000e+00> : vector<128x128xf32>
    %11 = tpu.matmul %9, %10, %cst_9 {dimension_numbers = #tpu.dot_dimension_numbers<[1], [0], [0], [1], [0, 0, 1, 1], [], []>} : vector<128x512xbf16>, vector<512x128xbf16>, vector<128x128xf32> -> vector<128x128xf32>
    %c0_10 = arith.constant 0 : index
    %c0_11 = arith.constant 0 : index
    %12 = vector.load %arg5[%c0_10, %c0_11] : memref<1x128xf32, #tpu.memory_space<vmem>>, vector<1x128xf32>
    %13 = vector.broadcast %12 : vector<1x128xf32> to vector<128x128xf32>
    %14 = arith.addf %11, %13 : vector<128x128xf32>
    %cst_12 = arith.constant 0.000000e+00 : f32
    %15 = vector.broadcast %cst_12 : f32 to vector<128x128xf32>
    %16 = arith.maximumf %14, %15 : vector<128x128xf32>
    %17 = vector.extract_strided_slice %16 {offsets = [0, 0], sizes = [8, 128], strides = [1, 1]} : vector<128x128xf32> to vector<8x128xf32>
    %18 = vector.extract_strided_slice %16 {offsets = [8, 0], sizes = [8, 128], strides = [1, 1]} : vector<128x128xf32> to vector<8x128xf32>
    %19 = vector.extract_strided_slice %16 {offsets = [16, 0], sizes = [8, 128], strides = [1, 1]} : vector<128x128xf32> to vector<8x128xf32>
    %20 = vector.extract_strided_slice %16 {offsets = [24, 0], sizes = [8, 128], strides = [1, 1]} : vector<128x128xf32> to vector<8x128xf32>
    %21 = tpu.concatenate %17, %18, %19, %20 in 1 : vector<8x128xf32>, vector<8x128xf32>, vector<8x128xf32>, vector<8x128xf32> -> vector<8x512xf32>
    %22 = arith.truncf %21 : vector<8x512xf32> to vector<8x512xbf16>
    %c0_13 = arith.constant 0 : index
    %c0_14 = arith.constant 0 : index
    %c0_15 = arith.constant 0 : index
    %23 = vector.load %arg6[%c0_13, %c0_14, %c0_15] : memref<4x512x256xbf16, #tpu.memory_space<vmem>>, vector<1x512x256xbf16>
    %24 = vector.shape_cast %23 : vector<1x512x256xbf16> to vector<512x256xbf16>
    %cst_16 = arith.constant dense<0.000000e+00> : vector<8x256xf32>
    %25 = tpu.matmul %22, %24, %cst_16 {dimension_numbers = #tpu.dot_dimension_numbers<[1], [0], [0], [1], [0, 0, 1, 1], [], []>} : vector<8x512xbf16>, vector<512x256xbf16>, vector<8x256xf32> -> vector<8x256xf32>
    %26 = vector.extract_strided_slice %16 {offsets = [32, 0], sizes = [8, 128], strides = [1, 1]} : vector<128x128xf32> to vector<8x128xf32>
    %27 = vector.extract_strided_slice %16 {offsets = [40, 0], sizes = [8, 128], strides = [1, 1]} : vector<128x128xf32> to vector<8x128xf32>
    %28 = vector.extract_strided_slice %16 {offsets = [48, 0], sizes = [8, 128], strides = [1, 1]} : vector<128x128xf32> to vector<8x128xf32>
    %29 = vector.extract_strided_slice %16 {offsets = [56, 0], sizes = [8, 128], strides = [1, 1]} : vector<128x128xf32> to vector<8x128xf32>
    %30 = tpu.concatenate %26, %27, %28, %29 in 1 : vector<8x128xf32>, vector<8x128xf32>, vector<8x128xf32>, vector<8x128xf32> -> vector<8x512xf32>
    %31 = arith.truncf %30 : vector<8x512xf32> to vector<8x512xbf16>
    %c1 = arith.constant 1 : index
    %c0_17 = arith.constant 0 : index
    %c0_18 = arith.constant 0 : index
    %32 = vector.load %arg6[%c1, %c0_17, %c0_18] : memref<4x512x256xbf16, #tpu.memory_space<vmem>>, vector<1x512x256xbf16>
    %33 = vector.shape_cast %32 : vector<1x512x256xbf16> to vector<512x256xbf16>
    %cst_19 = arith.constant dense<0.000000e+00> : vector<8x256xf32>
    %34 = tpu.matmul %31, %33, %cst_19 {dimension_numbers = #tpu.dot_dimension_numbers<[1], [0], [0], [1], [0, 0, 1, 1], [], []>} : vector<8x512xbf16>, vector<512x256xbf16>, vector<8x256xf32> -> vector<8x256xf32>
    %35 = arith.addf %25, %34 : vector<8x256xf32>
    %36 = vector.extract_strided_slice %16 {offsets = [64, 0], sizes = [8, 128], strides = [1, 1]} : vector<128x128xf32> to vector<8x128xf32>
    %37 = vector.extract_strided_slice %16 {offsets = [72, 0], sizes = [8, 128], strides = [1, 1]} : vector<128x128xf32> to vector<8x128xf32>
    %38 = vector.extract_strided_slice %16 {offsets = [80, 0], sizes = [8, 128], strides = [1, 1]} : vector<128x128xf32> to vector<8x128xf32>
    %39 = vector.extract_strided_slice %16 {offsets = [88, 0], sizes = [8, 128], strides = [1, 1]} : vector<128x128xf32> to vector<8x128xf32>
    %40 = tpu.concatenate %36, %37, %38, %39 in 1 : vector<8x128xf32>, vector<8x128xf32>, vector<8x128xf32>, vector<8x128xf32> -> vector<8x512xf32>
    %41 = arith.truncf %40 : vector<8x512xf32> to vector<8x512xbf16>
    %c2 = arith.constant 2 : index
    %c0_20 = arith.constant 0 : index
    %c0_21 = arith.constant 0 : index
    %42 = vector.load %arg6[%c2, %c0_20, %c0_21] : memref<4x512x256xbf16, #tpu.memory_space<vmem>>, vector<1x512x256xbf16>
    %43 = vector.shape_cast %42 : vector<1x512x256xbf16> to vector<512x256xbf16>
    %cst_22 = arith.constant dense<0.000000e+00> : vector<8x256xf32>
    %44 = tpu.matmul %41, %43, %cst_22 {dimension_numbers = #tpu.dot_dimension_numbers<[1], [0], [0], [1], [0, 0, 1, 1], [], []>} : vector<8x512xbf16>, vector<512x256xbf16>, vector<8x256xf32> -> vector<8x256xf32>
    %45 = arith.addf %35, %44 : vector<8x256xf32>
    %46 = vector.extract_strided_slice %16 {offsets = [96, 0], sizes = [8, 128], strides = [1, 1]} : vector<128x128xf32> to vector<8x128xf32>
    %47 = vector.extract_strided_slice %16 {offsets = [104, 0], sizes = [8, 128], strides = [1, 1]} : vector<128x128xf32> to vector<8x128xf32>
    %48 = vector.extract_strided_slice %16 {offsets = [112, 0], sizes = [8, 128], strides = [1, 1]} : vector<128x128xf32> to vector<8x128xf32>
    %49 = vector.extract_strided_slice %16 {offsets = [120, 0], sizes = [8, 128], strides = [1, 1]} : vector<128x128xf32> to vector<8x128xf32>
    %50 = tpu.concatenate %46, %47, %48, %49 in 1 : vector<8x128xf32>, vector<8x128xf32>, vector<8x128xf32>, vector<8x128xf32> -> vector<8x512xf32>
    %51 = arith.truncf %50 : vector<8x512xf32> to vector<8x512xbf16>
    %c3 = arith.constant 3 : index
    %c0_23 = arith.constant 0 : index
    %c0_24 = arith.constant 0 : index
    %52 = vector.load %arg6[%c3, %c0_23, %c0_24] : memref<4x512x256xbf16, #tpu.memory_space<vmem>>, vector<1x512x256xbf16>
    %53 = vector.shape_cast %52 : vector<1x512x256xbf16> to vector<512x256xbf16>
    %cst_25 = arith.constant dense<0.000000e+00> : vector<8x256xf32>
    %54 = tpu.matmul %51, %53, %cst_25 {dimension_numbers = #tpu.dot_dimension_numbers<[1], [0], [0], [1], [0, 0, 1, 1], [], []>} : vector<8x512xbf16>, vector<512x256xbf16>, vector<8x256xf32> -> vector<8x256xf32>
    %55 = arith.addf %45, %54 : vector<8x256xf32>
    %c0_26 = arith.constant 0 : index
    %c0_27 = arith.constant 0 : index
    %56 = vector.load %arg7[%c0_26, %c0_27] : memref<1x256xf32, #tpu.memory_space<vmem>>, vector<1x256xf32>
    %57 = vector.broadcast %56 : vector<1x256xf32> to vector<8x256xf32>
    %58 = arith.addf %55, %57 : vector<8x256xf32>
    %cst_28 = arith.constant 0.000000e+00 : f32
    %59 = vector.broadcast %cst_28 : f32 to vector<8x256xf32>
    %60 = arith.maximumf %58, %59 : vector<8x256xf32>
    %61 = arith.truncf %60 : vector<8x256xf32> to vector<8x256xbf16>
    %c0_29 = arith.constant 0 : index
    %c0_30 = arith.constant 0 : index
    %62 = vector.load %arg8[%c0_29, %c0_30] : memref<256x128xbf16, #tpu.memory_space<vmem>>, vector<256x128xbf16>
    %cst_31 = arith.constant dense<0.000000e+00> : vector<8x128xf32>
    %63 = tpu.matmul %61, %62, %cst_31 {dimension_numbers = #tpu.dot_dimension_numbers<[1], [0], [0], [1], [0, 0, 1, 1], [], []>} : vector<8x256xbf16>, vector<256x128xbf16>, vector<8x128xf32> -> vector<8x128xf32>
    %c0_32 = arith.constant 0 : index
    %c0_33 = arith.constant 0 : index
    %64 = vector.load %arg9[%c0_32, %c0_33] : memref<1x128xf32, #tpu.memory_space<vmem>>, vector<1x128xf32>
    %65 = vector.broadcast %64 : vector<1x128xf32> to vector<8x128xf32>
    %66 = arith.addf %63, %65 : vector<8x128xf32>
    %c0_34 = arith.constant 0 : index
    %c0_35 = arith.constant 0 : index
    %67 = vector.load %arg10[%c0_34, %c0_35] : memref<8x128xf32, #tpu.memory_space<vmem>>, vector<8x128xf32>
    tpu.vector_store %arg10[%c0_34, %c0_35], %66 {strides = array<i32>} : memref<8x128xf32, #tpu.memory_space<vmem>>, vector<8x128xf32>,
    return
  }
  func.func @transform_0(%arg0: i32) -> (i32, i32, i32) {
    %c0_i32 = arith.constant 0 : i32
    %c0_i32_0 = arith.constant 0 : i32
    %c0_i32_1 = arith.constant 0 : i32
    return %c0_i32, %arg0, %c0_i32_0 : i32, i32, i32
  }
  func.func @transform_1(%arg0: i32) -> (i32, i32) {
    %c0_i32 = arith.constant 0 : i32
    %c0_i32_0 = arith.constant 0 : i32
    %c0_i32_1 = arith.constant 0 : i32
    return %c0_i32, %c0_i32_0 : i32, i32
  }
  func.func @transform_2(%arg0: i32) -> (i32, i32) {
    %c0_i32 = arith.constant 0 : i32
    %c0_i32_0 = arith.constant 0 : i32
    %c0_i32_1 = arith.constant 0 : i32
    return %c0_i32, %c0_i32_0 : i32, i32
  }
  func.func @transform_3(%arg0: i32) -> (i32, i32) {
    %c0_i32 = arith.constant 0 : i32
    %c0_i32_0 = arith.constant 0 : i32
    %c0_i32_1 = arith.constant 0 : i32
    return %c0_i32, %c0_i32_0 : i32, i32
  }
  func.func @transform_4(%arg0: i32) -> (i32, i32) {
    %c0_i32 = arith.constant 0 : i32
    %c0_i32_0 = arith.constant 0 : i32
    %c0_i32_1 = arith.constant 0 : i32
    return %c0_i32, %c0_i32_0 : i32, i32
  }
  func.func @transform_5(%arg0: i32) -> (i32, i32, i32) {
    %c0_i32 = arith.constant 0 : i32
    %c0_i32_0 = arith.constant 0 : i32
    %c0_i32_1 = arith.constant 0 : i32
    %c0_i32_2 = arith.constant 0 : i32
    return %c0_i32, %c0_i32_0, %c0_i32_1 : i32, i32, i32
  }
  func.func @transform_6(%arg0: i32) -> (i32, i32) {
    %c0_i32 = arith.constant 0 : i32
    %c0_i32_0 = arith.constant 0 : i32
    %c0_i32_1 = arith.constant 0 : i32
    return %c0_i32, %c0_i32_0 : i32, i32
  }
  func.func @transform_7(%arg0: i32) -> (i32, i32) {
    %c0_i32 = arith.constant 0 : i32
    %c0_i32_0 = arith.constant 0 : i32
    %c0_i32_1 = arith.constant 0 : i32
    return %c0_i32, %c0_i32_0 : i32, i32
  }
  func.func @transform_8(%arg0: i32) -> (i32, i32) {
    %c0_i32 = arith.constant 0 : i32
    %c0_i32_0 = arith.constant 0 : i32
    %c0_i32_1 = arith.constant 0 : i32
    return %c0_i32, %c0_i32_0 : i32, i32
  }
  func.func @transform_9(%arg0: i32) -> (i32, i32) {
    %c0_i32 = arith.constant 0 : i32
    %c0_i32_0 = arith.constant 0 : i32
    return %arg0, %c0_i32 : i32, i32
  }
}

</mosaic_0001>

<bundles_post_ra>
// kernel: value_network_forward.1
= control target key start
LH: loop header
LB: loop body
LE: loop exit
PB: predicated region body
PF: predicated region fallthrough
CT: control target
= control target key end

     0   :  { %14 = vsyncpa [#allocation3], 0  ;;  %s4241_s30 = smov [#allocation2]   ;;  %s5474_s0 = inlined_call_operand.vmem [shape: bf16[16,8,32], index: 0, kind: input, shape index: {}]   ;;  %s5475_s1 = inlined_call_operand.hbm [shape: bf16[32,512], index: 1, kind: input, shape index: {}]   ;;  %s5476_s2 = inlined_call_operand.vmem [shape: f32[1,512], index: 2, kind: input, shape index: {}]   ;;  %s5477_s3 = inlined_call_operand.vmem [shape: bf16[512,128], index: 3, kind: input, shape index: {}]   ;;  %s5478_s4 = inlined_call_operand.vmem [shape: f32[1,128], index: 4, kind: input, shape index: {}]   ;;  %s5479_s5 = inlined_call_operand.vmem [shape: bf16[4,512,256], index: 5, kind: input, shape index: {}]   ;;  %s5480_s6 = inlined_call_operand.vmem [shape: f32[1,256], index: 6, kind: input, shape index: {}]   ;;  %s5481_s7 = inlined_call_operand.vmem [shape: bf16[256,128], index: 7, kind: input, shape index: {}]   ;;  %s5482_s8 = inlined_call_operand.vmem [shape: f32[1,128], index: 8, kind: input, shape index: {}]   ;;  %s5483_s9 = inlined_call_operand.vmem [shape: f32[8,128], index: 9, kind: output, shape index: {}]  }
   0x1   :  { %s22_s10 = sshll.u32 %s4241_s30, 4  ;;  %s23_s10 = int_to_ptr.vmem [resolvable:$true] %s22_s10 }
   0x2   :  { %s4227_s11 = scalar_lea.vmem %s23_s10, 1024  ;;  %p4232_p1 = scmp.lt.s32.totalorder %s23_s10, %s23_s10 }
   0x3   :  { %p4228_p0 = scmp.ne.s32.totalorder %s23_s10, %s4227_s11  ;;  %p4233_p2 = scmp.lt.s32.totalorder %s4227_s11, %s4227_s11 }
   0x5   :  { %p4234_p3 = por %p4233_p2, %p4232_p1 }
   0x7   :  { %p4235_p4 = pnand %p4234_p3, %p4228_p0 }
   0x9   :  { %4238 = shalt.err (!%p4235_p4)
}
   0xa   :  { %s4242_s12 = smov 256   ;;  %s4243_s13 = smov 16  }
   0xb   :  { %28 = dma.hbm_to_vmem [thread:$0]  %s5475_s1, 1024, %s23_s10, [#allocation3], %s4242_s12, %s4242_s12, %s4243_s13  }
   0xc   :  { %4239 = dma.done.wait [#allocation3], 1024  }
   0xd   :  { %4240 = vsyncadd [#allocation3], 4294966272  ;;  %v4244_v0 = vmov 0   ;;  %v3767_v1 = vld [vmem:[#allocation2 + $0x24] ss:$16 sps:$4 sm:$0xff]   ;;  %vm173_vm0 = vcmask 261120   ;;  %v73_v51 = vlaneseq }
   0xe   :  { %230 = vmatprep.mubr.bf16.mxu0 %v4244_v0  ;;  %290 = vmatprep.mubr.bf16.mxu1 %v4244_v0  ;;  %v3769_v2 = vld [vmem:[#allocation2 + $0x20] ss:$16 sps:$4 sm:$0xff]   ;;  %v3770_v3 = vld [vmem:[#allocation2 + $0x4] ss:$16 sps:$4 sm:$0xff]   ;;  %v3777_v6 = vld [vmem:[#allocation2 + $0x2c] ss:$16 sps:$4 sm:$0xff]  }
   0xf   :  { %210 = vmatprep.subr.bf16.mxu0 %v3767_v1  ;;  %3759 = vmatprep.subr.bf16.mxu1 %v3767_v1  ;;  %v3772_v4 = vld [vmem:[#allocation2] ss:$16 sps:$4 sm:$0xff]   ;;  %v3775_v8 = vld [vmem:[#allocation2 + $0x28] ss:$16 sps:$4 sm:$0xff]   ;;  %v3782_v9 = vld [vmem:[#allocation2 + $0xc] ss:$16 sps:$4 sm:$0xff]  }
  0x10   :  { %211 = vmatpush1.bf16.msra.mxu0 %v3769_v2  ;;  %3761 = vmatpush1.bf16.msra.mxu1 %v3769_v2  ;;  %v3773_v5 = vld [vmem:[%s5474_s0] sm:$0xff]   ;;  %v4306_v7 = vld [vmem:[%s5474_s0 + $0x30] sm:$0xff]   ;;  %v3780_v10 = vld [vmem:[#allocation2 + $0x8] ss:$16 sps:$4 sm:$0xff]   ;;  %v4464_v52 = vshrl.u32 %v73_v51, 7 }
  0x11   :  { %212 = vmatprep.subr.bf16.mxu0 %v3770_v3  ;;  %3760 = vmatprep.subr.bf16.mxu1 %v3770_v3  ;;  %v3778_v11 = vld [vmem:[%s5474_s0 + $0x8] sm:$0xff]   ;;  %v4319_v12 = vld [vmem:[%s5474_s0 + $0x38] sm:$0xff]   ;;  %v3783_v16 = vld [vmem:[%s5474_s0 + $0x10] sm:$0xff]  }
  0x12   :  { %v3787_v13 = vld [vmem:[%s5477_s3 + $0xf8] sm:$0xff]   ;;  %v3795_v18 = vld [vmem:[%s5477_s3 + $0x70] sm:$0xff]   ;;  %v3797_v20 = vld [vmem:[%s5477_s3 + $0x68] sm:$0xff]   ;;  %v75_v53 = vsub.s32 0, %v4464_v52  ;;  %v79_v55 = vsub.s32 1, %v4464_v52 }
  0x13   :  { %v3791_v14 = vld [vmem:[%s5477_s3 + $0x78] sm:$0xff]   ;;  %v3796_v19 = vld [vmem:[%s5477_s3 + $0x30] sm:$0xff]   ;;  %v3799_v23 = vld [vmem:[%s5477_s3 + $0x28] sm:$0xff]  }
  0x14   :  { %213 = vmatpush1.bf16.msra.mxu0 %v3772_v4  ;;  %3762 = vmatpush1.bf16.msra.mxu1 %v3772_v4  ;;  %v3792_v15 = vld [vmem:[%s5477_s3 + $0x38] sm:$0xff]   ;;  %v3789_v21 = vld [vmem:[%s5477_s3 + $0xf0] sm:$0xff]   ;;  %v3793_v24 = vld [vmem:[%s5477_s3 + $0xe8] sm:$0xff]  }
  0x15   :  { %323 = vmatprep.subr.bf16.mxu1 %v3777_v6  ;;  %3609 = vmatprep.subr.bf16.mxu0 %v3791_v14  ;;  %v3788_v17 = vld [vmem:[%s5477_s3 + $0xb8] sm:$0xff]   ;;  %v3790_v22 = vld [vmem:[%s5477_s3 + $0xb0] sm:$0xff]   ;;  %v3801_v25 = vld [vmem:[%s5477_s3 + $0x60] sm:$0xff]  }
  0x16   :  { %v3802_v26 = vld [vmem:[%s5477_s3 + $0x20] sm:$0xff]   ;;  %v3784_v27 = vld [vmem:[%s5474_s0 + $0x18] sm:$0xff]   ;;  %v3794_v28 = vld [vmem:[%s5477_s3 + $0xa8] sm:$0xff]  }
  0x17   :  { %3095 = vmatmul.mubr.msk.bf16.vlgmr.msra.gmra.mxu0 %vm173_vm0, %v3773_v5  ;;  %3101 = vmatmul.mubr.msk.bf16.vlgmr.msra.gmra.mxu1 %vm173_vm0, %v4306_v7  ;;  %v3803_v29 = vld [vmem:[%s5477_s3 + $0x58] sm:$0xff]   ;;  %v3798_v30 = vld [vmem:[%s5477_s3 + $0xe0] sm:$0xff]   ;;  %v3786_v36 = vld [vmem:[%s5474_s0 + $0x28] sm:$0xff]  }
  0x18   :  { %324 = vmatpush1.bf16.msra.mxu1 %v3775_v8  ;;  %240 = vmatprep.mubr.bf16.mxu0 %v4244_v0  ;;  %v3805_v31 = vld [vmem:[%s5477_s3 + $0x18] sm:$0xff]   ;;  %v3800_v32 = vld [vmem:[%s5477_s3 + $0xa0] sm:$0xff]   ;;  %v3807_v37 = vld [vmem:[%s5477_s3 + $0x50] sm:$0xff]  }
  0x19   :  { %300 = vmatprep.mubr.bf16.mxu1 %v4244_v0  ;;  %325 = vmatprep.subr.bf16.mxu1 %v3782_v9  ;;  %v3804_v33 = vld [vmem:[%s5477_s3 + $0xd8] sm:$0xff]   ;;  %v3785_v34 = vld [vmem:[%s5474_s0 + $0x20] sm:$0xff]   ;;  %v3808_v38 = vld [vmem:[%s5477_s3 + $0x10] sm:$0xff]  }
  0x1a   :  { %3610 = vmatpush3.bf16.msra.mxu0 %v3792_v15  ;;  %v3806_v35 = vld [vmem:[%s5477_s3 + $0x98] sm:$0xff]   ;;  %v3809_v39 = vld [vmem:[%s5477_s3 + $0x48] sm:$0xff]   ;;  %v3813_v41 = vld [vmem:[%s5477_s3 + $0x40] sm:$0xff]  }
  0x1b   :  { %3611 = vmatprep.subr.bf16.mxu0 %v3795_v18  ;;  %v3811_v40 = vld [vmem:[%s5477_s3 + $0x8] sm:$0xff]   ;;  %v3814_v42 = vld [vmem:[%s5477_s3] sm:$0xff]   ;;  %v3810_v43 = vld [vmem:[%s5477_s3 + $0xd0] sm:$0xff]  }
  0x1c   :  { %326 = vmatpush1.bf16.msra.mxu1 %v3780_v10  ;;  %v3812_v44 = vld [vmem:[%s5477_s3 + $0x90] sm:$0xff]   ;;  %v3815_v45 = vld [vmem:[%s5477_s3 + $0xc8] sm:$0xff]   ;;  %v3817_v47 = vld [vmem:[%s5477_s3 + $0xc0] sm:$0xff]  }
  0x1d   :  { %3673 = vmatprep.subr.bf16.mxu1 %v3787_v13  ;;  %v3816_v46 = vld [vmem:[%s5477_s3 + $0x88] sm:$0xff]   ;;  %v3818_v48 = vld [vmem:[%s5477_s3 + $0x80] sm:$0xff]   ;;  %v3821_v49 = vld [vmem:[%s5479_s5 + $0x274] ss:$8 sps:$4 sm:$0xff]  }
  0x1e   :  { %3612 = vmatpush3.bf16.msra.mxu0 %v3796_v19  ;;  %v3830_v50 = vld [vmem:[%s5479_s5 + $0x374] ss:$8 sps:$4 sm:$0xff]   ;;  %v71_v54 = vld [vmem:[%s5476_s2] sm:$0xf]  ;;  %v3819_v18 = vld [vmem:[%s5479_s5 + $0x270] ss:$8 sps:$4 sm:$0xff]  }
  0x1f   :  { %3096 = vmatmul.mubr.msk.bf16.gmra.mxu0 %vm173_vm0, %v3778_v11  ;;  %3102 = vmatmul.mubr.msk.bf16.gmra.mxu1 %vm173_vm0, %v4319_v12  ;;  %v4473_v56 = vrot.slane %v71_v54, %v75_v53  ;;  %v4479_v59 = vrot.slane %v71_v54, %v79_v55 }
  0x20   :  { %250 = vmatprep.mubr.bf16.mxu0 %v4244_v0  ;;  %343 = vmatprep.mubr.bf16.mxu1 %v4244_v0 }
  0x21   :  { %3613 = vmatprep.subr.bf16.mxu0 %v3797_v20 }
  0x22   :  { %3614 = vmatpush3.bf16.msra.mxu0 %v3799_v23  ;;  %v87_v23 = vsub.s32 3, %v4464_v52 }
  0x23   :  { %3615 = vmatprep.subr.bf16.mxu0 %v3801_v25 }
  0x26   :  { %3616 = vmatpush3.bf16.msra.mxu0 %v3802_v26 }
  0x27   :  { %3097 = vmatmul.mubr.msk.bf16.gmra.mxu0 %vm173_vm0, %v3783_v16  ;;  %3103 = vmatmul.mubr.msk.bf16.vlgmr.msra.gmra.mxu1 %vm173_vm0, %v3773_v5 }
  0x28   :  { %260 = vmatprep.mubr.bf16.mxu0 %v4244_v0  ;;  %353 = vmatprep.mubr.bf16.mxu1 %v4244_v0 }
  0x29   :  { %3674 = vmatpush3.bf16.msra.mxu1 %v3788_v17  ;;  %3617 = vmatprep.subr.bf16.mxu0 %v3803_v29 }
  0x2a   :  { %3675 = vmatprep.subr.bf16.mxu1 %v3789_v21  ;;  %3618 = vmatpush3.bf16.msra.mxu0 %v3805_v31  ;;  %v3824_v21 = vld [vmem:[%s5479_s5 + $0x264] ss:$8 sps:$4 sm:$0xff]   ;;  %v3822_v31 = vld [vmem:[%s5479_s5 + $0x260] ss:$8 sps:$4 sm:$0xff]  }
  0x2b   :  { %3619 = vmatprep.subr.bf16.mxu0 %v3807_v37 }
  0x2d   :  { %3676 = vmatpush3.bf16.msra.mxu1 %v3790_v22 }
  0x2e   :  { %3677 = vmatprep.subr.bf16.mxu1 %v3793_v24  ;;  %3620 = vmatpush3.bf16.msra.mxu0 %v3808_v38 }
  0x2f   :  { %3098 = vmatmul.mubr.msk.bf16.gmra.mxu0 %vm173_vm0, %v3784_v27  ;;  %3104 = vmatmul.mubr.msk.bf16.gmra.mxu1 %vm173_vm0, %v3778_v11 }
  0x30   :  { %270 = vmatprep.mubr.bf16.mxu0 %v4244_v0  ;;  %363 = vmatprep.mubr.bf16.mxu1 %v4244_v0 }
  0x31   :  { %3678 = vmatpush3.bf16.msra.mxu1 %v3794_v28  ;;  %3621 = vmatprep.subr.bf16.mxu0 %v3809_v39 }
  0x32   :  { %3679 = vmatprep.subr.bf16.mxu1 %v3798_v30  ;;  %3622 = vmatpush3.bf16.msra.mxu0 %v3811_v40 }
  0x33   :  { %3623 = vmatprep.subr.bf16.mxu0 %v3813_v41 }
  0x35   :  { %3680 = vmatpush3.bf16.msra.mxu1 %v3800_v32 }
  0x36   :  { %3681 = vmatprep.subr.bf16.mxu1 %v3804_v33  ;;  %3624 = vmatpush3.bf16.msra.mxu0 %v3814_v42 }
  0x37   :  { %3099 = vmatmul.mubr.msk.bf16.gmra.mxu0 %vm173_vm0, %v3785_v34  ;;  %3105 = vmatmul.mubr.msk.bf16.gmra.mxu1 %vm173_vm0, %v3783_v16 }
  0x38   :  { %280 = vmatprep.mubr.bf16.mxu0 %v4244_v0  ;;  %373 = vmatprep.mubr.bf16.mxu1 %v4244_v0 }
  0x39   :  { %3682 = vmatpush3.bf16.msra.mxu1 %v3806_v35  ;;  %1450 = vmatprep.subr.bf16.mxu0 %v3821_v49 }
  0x3a   :  { %3683 = vmatprep.subr.bf16.mxu1 %v3810_v43 }
  0x3d   :  { %3684 = vmatpush3.bf16.msra.mxu1 %v3812_v44  ;;  %v3825_v44 = vld [vmem:[%s5479_s5 + $0x250] ss:$8 sps:$4 sm:$0xff]  }
  0x3e   :  { %3685 = vmatprep.subr.bf16.mxu1 %v3815_v45 }
  0x3f   :  { %3100 = vmatmul.mubr.msk.bf16.gmra.mxu0 %vm173_vm0, %v3786_v36  ;;  %3106 = vmatmul.mubr.msk.bf16.gmra.mxu1 %vm173_vm0, %v3784_v27  ;;  %v83_v27 = vsub.s32 2, %v4464_v52 }
  0x40   :  { %383 = vmatprep.mubr.bf16.mxu1 %v4244_v0 }
  0x41   :  { %3686 = vmatpush3.bf16.msra.mxu1 %v3816_v46  ;;  %v4520_v39 = vrot.slane %v71_v54, %v83_v27 }
  0x42   :  { %3687 = vmatprep.subr.bf16.mxu1 %v3817_v47  ;;  %v3833_v47 = vld [vmem:[%s5479_s5 + $0x244] ss:$8 sps:$4 sm:$0xff]  }
  0x45   :  { %3688 = vmatpush3.bf16.msra.mxu1 %v3818_v48 }
  0x46   :  { %1491 = vmatprep.subr.bf16.mxu1 %v3830_v50 }
  0x47   :  { %3107 = vmatmul.mubr.msk.bf16.gmra.mxu1 %vm173_vm0, %v3785_v34  ;;  %v3827_v34 = vld [vmem:[%s5479_s5 + $0x254] ss:$8 sps:$4 sm:$0xff]  }
  0x48   :  { %393 = vmatprep.mubr.bf16.mxu1 %v4244_v0 }
  0x4f   :  { %3108 = vmatmul.mubr.msk.bf16.gmra.mxu1 %vm173_vm0, %v3786_v36  ;;  %v4517_v36 = vrot.slane %v71_v54, %v87_v23  ;;  %v3828_v23 = vld [vmem:[%s5479_s5 + $0x370] ss:$8 sps:$4 sm:$0xff]  }
  0x50   :  { %403 = vmatprep.mubr.bf16.mxu1 %v4244_v0 }
  0x57   :  { %3109 = vmatmul.mubr.msk.bf16.gmra.mxu1 %vm173_vm0, %v4306_v7 }
  0x58   :  { %413 = vmatprep.mubr.bf16.mxu1 %v4244_v0 }
  0x5f   :  { %3110 = vmatmul.mubr.msk.bf16.gmra.mxu1 %vm173_vm0, %v4319_v12 }
  0xd7   :  { %v232_v57 = vpop.f32.mrf.mxu0  ;;  %v4475_v58 = vpop.f32.mrf.mxu1 }
  0xd8   :  { %v233_v60 = vadd.f32 %v232_v57, %v4473_v56 }
  0xd9   :  { %v234_v61 = vpop.f32.mrf.mxu0  ;;  %v4482_v62 = vpop.f32.mrf.mxu1 }
  0xda   :  { %v235_v63 = vadd.f32 %v234_v61, %v4479_v59  ;;  %v424_v3 = vmax.f32 %v233_v60, 0.0 }
  0xdb   :  { %v236_v0 = vpop.f32.mrf.mxu0  ;;  %v4485_v1 = vpop.f32.mrf.mxu1 }
  0xdc   :  { %v237_v2 = vadd.f32 %v236_v0, %v4473_v56  ;;  %v425_v6 = vmax.f32 %v235_v63, 0.0 }
  0xdd   :  { %v238_v4 = vpop.f32.mrf.mxu0  ;;  %v4488_v5 = vpop.f32.mrf.mxu1 }
  0xde   :  { %v428_v7 = vmax.f32 %v237_v2, 0.0  ;;  %v239_v8 = vadd.f32 %v238_v4, %v4479_v59 }
  0xdf   :  { %v242_v9 = vpop.f32.mrf.mxu0  ;;  %v4491_v10 = vpop.f32.mrf.mxu1 }
  0xe0   :  { %v429_v11 = vmax.f32 %v239_v8, 0.0  ;;  %v488_v12 = vpack.c.bf16 %v428_v7, %v424_v3  ;;  %v243_v13 = vadd.f32 %v242_v9, %v4473_v56  ;;  %v3831_v3 = vld [vmem:[%s5479_s5 + $0x240] ss:$8 sps:$4 sm:$0xff]   ;;  %v3839_v8 = vld [vmem:[%s5479_s5 + $0x234] ss:$8 sps:$4 sm:$0xff]  }
  0xe1   :  { %v244_v14 = vpop.f32.mrf.mxu0  ;;  %v4494_v15 = vpop.f32.mrf.mxu1 }
  0xe2   :  { %v489_v16 = vpack.c.bf16 %v429_v11, %v425_v6  ;;  %v245_v17 = vadd.f32 %v244_v14, %v4479_v59  ;;  %v432_v24 = vmax.f32 %v243_v13, 0.0 }
  0xe3   :  { %v246_v19 = vpop.f32.mrf.mxu0  ;;  %v4500_v20 = vpop.f32.mrf.mxu1 }
  0xe4   :  { %v247_v22 = vadd.f32 %v246_v19, %v4473_v56  ;;  %815 = vmatprep.mubr.bf16.mxu0 %v489_v16  ;;  %v433_v28 = vmax.f32 %v245_v17, 0.0 }
  0xe5   :  { %v248_v25 = vpop.f32.mrf.mxu0  ;;  %v4507_v26 = vpop.f32.mrf.mxu1  ;;  %816 = vmatmul.mubr.bf16.vlgmr.msra.gmra.mxu0 %v488_v12 }
  0xe6   :  { %v436_v29 = vmax.f32 %v247_v22, 0.0  ;;  %v249_v30 = vadd.f32 %v248_v25, %v4479_v59  ;;  %1451 = vmatpush1.bf16.msra.mxu0 %v3819_v18 }
  0xe7   :  { %v252_v32 = vpop.f32.mrf.mxu0  ;;  %v345_v33 = vpop.f32.mrf.mxu1  ;;  %1452 = vmatprep.subr.bf16.mxu0 %v3824_v21 }
  0xe8   :  { %v437_v35 = vmax.f32 %v249_v30, 0.0  ;;  %v492_v37 = vpack.c.bf16 %v436_v29, %v432_v24  ;;  %v253_v38 = vadd.f32 %v252_v32, %v4473_v56  ;;  %v346_v54 = vadd.f32 %v345_v33, %v4520_v39  ;;  %v3837_v24 = vld [vmem:[%s5479_s5 + $0x230] ss:$8 sps:$4 sm:$0xff]   ;;  %v3836_v29 = vld [vmem:[%s5479_s5 + $0x364] ss:$8 sps:$4 sm:$0xff]  }
  0xe9   :  { %v254_v40 = vpop.f32.mrf.mxu0  ;;  %v347_v41 = vpop.f32.mrf.mxu1 }
  0xea   :  { %v493_v42 = vpack.c.bf16 %v437_v35, %v433_v28  ;;  %v255_v43 = vadd.f32 %v254_v40, %v4479_v59  ;;  %1453 = vmatpush1.bf16.msra.mxu0 %v3822_v31  ;;  %v348_v48 = vadd.f32 %v347_v41, %v4517_v36  ;;  %v440_v51 = vmax.f32 %v253_v38, 0.0 }
  0xeb   :  { %v256_v45 = vpop.f32.mrf.mxu0  ;;  %v349_v46 = vpop.f32.mrf.mxu1  ;;  %1454 = vmatprep.subr.bf16.mxu0 %v3827_v34  ;;  %v426_v13 = vmax.f32 %v346_v54, 0.0 }
  0xec   :  { %v257_v49 = vadd.f32 %v256_v45, %v4473_v56  ;;  %v350_v50 = vadd.f32 %v349_v46, %v4520_v39  ;;  %823 = vmatprep.mubr.bf16.mxu0 %v493_v42  ;;  %v441_v61 = vmax.f32 %v255_v43, 0.0  ;;  %v427_v9 = vmax.f32 %v348_v48, 0.0  ;;  %v3834_v43 = vld [vmem:[%s5479_s5 + $0x360] ss:$8 sps:$4 sm:$0xff]  }
  0xed   :  { %v258_v57 = vpop.f32.mrf.mxu0  ;;  %v351_v60 = vpop.f32.mrf.mxu1  ;;  %824 = vmatmul.mubr.bf16.gmra.mxu0 %v492_v37 }
  0xee   :  { %v444_v63 = vmax.f32 %v257_v49, 0.0  ;;  %v259_v0 = vadd.f32 %v258_v57, %v4479_v59  ;;  %v352_v2 = vadd.f32 %v351_v60, %v4517_v36  ;;  %1455 = vmatpush1.bf16.msra.mxu0 %v3825_v44  ;;  %v430_v4 = vmax.f32 %v350_v50, 0.0 }
  0xef   :  { %v262_v6 = vpop.f32.mrf.mxu0  ;;  %v355_v7 = vpop.f32.mrf.mxu1  ;;  %1456 = vmatprep.subr.bf16.mxu0 %v3833_v47  ;;  %v3842_v47 = vld [vmem:[%s5479_s5 + $0x354] ss:$8 sps:$4 sm:$0xff]  }
  0xf0   :  { %v445_v11 = vmax.f32 %v259_v0, 0.0  ;;  %v431_v12 = vmax.f32 %v352_v2, 0.0  ;;  %v496_v14 = vpack.c.bf16 %v444_v63, %v440_v51  ;;  %v263_v16 = vadd.f32 %v262_v6, %v4473_v56 }
  0xf1   :  { %v264_v17 = vpop.f32.mrf.mxu0  ;;  %v357_v18 = vpop.f32.mrf.mxu1  ;;  %v490_v25 = vpack.c.bf16 %v430_v4, %v426_v13  ;;  %v356_v34 = vadd.f32 %v355_v7, %v4520_v39 }
  0xf2   :  { %v497_v19 = vpack.c.bf16 %v445_v11, %v441_v61  ;;  %v491_v21 = vpack.c.bf16 %v431_v12, %v427_v9  ;;  %v265_v22 = vadd.f32 %v264_v17, %v4479_v59  ;;  %1457 = vmatpush1.bf16.msra.mxu0 %v3831_v3  ;;  %v358_v30 = vadd.f32 %v357_v18, %v4517_v36  ;;  %v3840_v3 = vld [vmem:[%s5479_s5 + $0x350] ss:$8 sps:$4 sm:$0xff]  }
  0xf3   :  { %v266_v27 = vpop.f32.mrf.mxu0  ;;  %v359_v28 = vpop.f32.mrf.mxu1  ;;  %1458 = vmatprep.subr.bf16.mxu0 %v3839_v8  ;;  %v448_v33 = vmax.f32 %v263_v16, 0.0  ;;  %v434_v51 = vmax.f32 %v356_v34, 0.0 }
  0xf4   :  { %v267_v31 = vadd.f32 %v266_v27, %v4473_v56  ;;  %v360_v32 = vadd.f32 %v359_v28, %v4520_v39  ;;  %831 = vmatprep.mubr.bf16.mxu0 %v497_v19  ;;  %912 = vmatprep.mubr.bf16.mxu1 %v491_v21  ;;  %v449_v38 = vmax.f32 %v265_v22, 0.0  ;;  %v435_v48 = vmax.f32 %v358_v30, 0.0 }
  0xf5   :  { %v268_v35 = vpop.f32.mrf.mxu0  ;;  %v361_v37 = vpop.f32.mrf.mxu1  ;;  %832 = vmatmul.mubr.bf16.gmra.mxu0 %v496_v14  ;;  %913 = vmatmul.mubr.bf16.vlgmr.msra.gmra.mxu1 %v490_v25 }
  0xf6   :  { %v452_v40 = vmax.f32 %v267_v31, 0.0  ;;  %v269_v41 = vadd.f32 %v268_v35, %v4479_v59  ;;  %v362_v42 = vadd.f32 %v361_v37, %v4517_v36  ;;  %1492 = vmatpush1.bf16.msra.mxu1 %v3828_v23  ;;  %1459 = vmatpush1.bf16.msra.mxu0 %v3837_v24  ;;  %v438_v44 = vmax.f32 %v360_v32, 0.0 }
  0xf7   :  { %v272_v45 = vpop.f32.mrf.mxu0  ;;  %v365_v46 = vpop.f32.mrf.mxu1  ;;  %1493 = vmatprep.subr.bf16.mxu1 %v3836_v29 }
  0xf8   :  { %v453_v49 = vmax.f32 %v269_v41, 0.0  ;;  %v439_v50 = vmax.f32 %v362_v42, 0.0  ;;  %v500_v54 = vpack.c.bf16 %v452_v40, %v448_v33  ;;  %v273_v57 = vadd.f32 %v272_v45, %v4473_v56 }
  0xf9   :  { %v274_v60 = vpop.f32.mrf.mxu0  ;;  %v367_v61 = vpop.f32.mrf.mxu1  ;;  %v494_v4 = vpack.c.bf16 %v438_v44, %v434_v51  ;;  %v366_v13 = vadd.f32 %v365_v46, %v4520_v39  ;;  %v295_v46 = vadd.f32 %v4482_v62, %v4479_v59 }
  0xfa   :  { %v501_v63 = vpack.c.bf16 %v453_v49, %v449_v38  ;;  %v495_v0 = vpack.c.bf16 %v439_v50, %v435_v48  ;;  %v275_v2 = vadd.f32 %v274_v60, %v4479_v59  ;;  %1494 = vmatpush1.bf16.msra.mxu1 %v3834_v43  ;;  %v368_v8 = vadd.f32 %v367_v61, %v4517_v36 }
  0xfb   :  { %v276_v6 = vpop.f32.mrf.mxu0  ;;  %v369_v7 = vpop.f32.mrf.mxu1  ;;  %1495 = vmatprep.subr.bf16.mxu1 %v3842_v47  ;;  %v456_v12 = vmax.f32 %v273_v57, 0.0  ;;  %v442_v29 = vmax.f32 %v366_v13, 0.0  ;;  %v299_v38 = vadd.f32 %v4488_v5, %v4479_v59  ;;  %v297_v13 = vadd.f32 %v4485_v1, %v4473_v56 }
  0xfc   :  { %v277_v9 = vadd.f32 %v276_v6, %v4473_v56  ;;  %v370_v11 = vadd.f32 %v369_v7, %v4520_v39  ;;  %839 = vmatprep.mubr.bf16.mxu0 %v501_v63  ;;  %920 = vmatprep.mubr.bf16.mxu1 %v495_v0  ;;  %v457_v17 = vmax.f32 %v275_v2, 0.0  ;;  %v443_v25 = vmax.f32 %v368_v8, 0.0 }
  0xfd   :  { %v278_v14 = vpop.f32.mrf.mxu0  ;;  %v371_v16 = vpop.f32.mrf.mxu1  ;;  %840 = vmatmul.mubr.bf16.gmra.mxu0 %v500_v54  ;;  %921 = vmatmul.mubr.bf16.gmra.mxu1 %v494_v4  ;;  %v477_v63 = vmax.f32 %v299_v38, 0.0  ;;  %v473_v8 = vmax.f32 %v295_v46, 0.0  ;;  %v305_v1 = vadd.f32 %v4494_v15, %v4479_v59 }
  0xfe   :  { %v460_v18 = vmax.f32 %v277_v9, 0.0  ;;  %v279_v19 = vadd.f32 %v278_v14, %v4479_v59  ;;  %v372_v21 = vadd.f32 %v371_v16, %v4517_v36  ;;  %1496 = vmatpush1.bf16.msra.mxu1 %v3840_v3  ;;  %v446_v22 = vmax.f32 %v370_v11, 0.0 }
  0xff   :  { %v282_v23 = vpop.f32.mrf.mxu0  ;;  %v375_v24 = vpop.f32.mrf.mxu1 }
 0x100   :  { %v461_v27 = vmax.f32 %v279_v19, 0.0  ;;  %v447_v28 = vmax.f32 %v372_v21, 0.0  ;;  %v504_v30 = vpack.c.bf16 %v460_v18, %v456_v12  ;;  %v283_v31 = vadd.f32 %v282_v23, %v4473_v56 }
 0x101   :  { %v284_v32 = vpop.f32.mrf.mxu0  ;;  %v377_v33 = vpop.f32.mrf.mxu1  ;;  %v498_v40 = vpack.c.bf16 %v446_v22, %v442_v29  ;;  %v376_v48 = vadd.f32 %v375_v24, %v4520_v39  ;;  %v309_v18 = vadd.f32 %v4507_v26, %v4479_v59  ;;  %v293_v21 = vadd.f32 %v4475_v58, %v4473_v56 }
 0x102   :  { %v505_v34 = vpack.c.bf16 %v461_v27, %v457_v17  ;;  %v499_v35 = vpack.c.bf16 %v447_v28, %v443_v25  ;;  %v285_v37 = vadd.f32 %v284_v32, %v4479_v59  ;;  %v378_v43 = vadd.f32 %v377_v33, %v4517_v36 }
 0x103   :  { %v286_v41 = vpop.f32.mrf.mxu0  ;;  %v379_v42 = vpop.f32.mrf.mxu1  ;;  %v464_v47 = vmax.f32 %v283_v31, 0.0  ;;  %v450_v62 = vmax.f32 %v376_v48, 0.0  ;;  %v513_v17 = vpack.c.bf16 %v477_v63, %v473_v8  ;;  %v476_v26 = vmax.f32 %v297_v13, 0.0 }
 0x104   :  { %v287_v44 = vadd.f32 %v286_v41, %v4473_v56  ;;  %v380_v45 = vadd.f32 %v379_v42, %v4520_v39  ;;  %847 = vmatprep.mubr.bf16.mxu0 %v505_v34  ;;  %928 = vmatprep.mubr.bf16.mxu1 %v499_v35  ;;  %v465_v5 = vmax.f32 %v285_v37, 0.0  ;;  %v451_v0 = vmax.f32 %v378_v43, 0.0 }
 0x105   :  { %v288_v49 = vpop.f32.mrf.mxu0  ;;  %v381_v50 = vpop.f32.mrf.mxu1  ;;  %848 = vmatmul.mubr.bf16.gmra.mxu0 %v504_v30  ;;  %929 = vmatmul.mubr.bf16.gmra.mxu1 %v498_v40  ;;  %v485_v29 = vmax.f32 %v309_v18, 0.0  ;;  %v472_v31 = vmax.f32 %v293_v21, 0.0  ;;  %v481_v34 = vmax.f32 %v305_v1, 0.0  ;;  %v303_v42 = vadd.f32 %v4491_v10, %v4473_v56 }
 0x106   :  { %v468_v51 = vmax.f32 %v287_v44, 0.0  ;;  %v289_v54 = vadd.f32 %v288_v49, %v4479_v59  ;;  %v382_v57 = vadd.f32 %v381_v50, %v4517_v36  ;;  %v454_v60 = vmax.f32 %v380_v45, 0.0 }
 0x107   :  { %v385_v61 = vpop.f32.mrf.mxu1  ;;  %v512_v38 = vpack.c.bf16 %v476_v26, %v472_v31  ;;  %v307_v59 = vadd.f32 %v4500_v20, %v4473_v56  ;;  %v517_v40 = vpack.c.bf16 %v485_v29, %v481_v34  ;;  %v480_v50 = vmax.f32 %v303_v42, 0.0  ;;  %v3854_v26 = vld [vmem:[%s5479_s5 + $0x334] ss:$8 sps:$4 sm:$0xff]   ;;  %v3852_v29 = vld [vmem:[%s5479_s5 + $0x330] ss:$8 sps:$4 sm:$0xff]  }
 0x108   :  { %v469_v2 = vmax.f32 %v289_v54, 0.0  ;;  %v455_v3 = vmax.f32 %v382_v57, 0.0  ;;  %v508_v4 = vpack.c.bf16 %v468_v51, %v464_v47  ;;  %v386_v6 = vadd.f32 %v385_v61, %v4520_v39  ;;  %v3860_v31 = vld [vmem:[%s5479_s5 + $0x324] ss:$8 sps:$4 sm:$0xff]   ;;  %v3866_v34 = vld [vmem:[%s5479_s5 + $0x314] ss:$8 sps:$4 sm:$0xff]  }
 0x109   :  { %v387_v7 = vpop.f32.mrf.mxu1  ;;  %v502_v14 = vpack.c.bf16 %v454_v60, %v450_v62  ;;  %v484_v48 = vmax.f32 %v307_v59, 0.0  ;;  %v3872_v59 = vld [vmem:[%s5479_s5 + $0x304] ss:$8 sps:$4 sm:$0xff]   ;;  %v3878_v42 = vld [vmem:[%s5479_s5 + $0x3f4] ss:$8 sps:$4 sm:$0xff]  }
 0x10a   :  { %v509_v9 = vpack.c.bf16 %v469_v2, %v465_v5  ;;  %v503_v11 = vpack.c.bf16 %v455_v3, %v451_v0  ;;  %v388_v12 = vadd.f32 %v387_v7, %v4517_v36  ;;  %v458_v22 = vmax.f32 %v386_v6, 0.0 }
 0x10b   :  { %v389_v16 = vpop.f32.mrf.mxu1  ;;  %v516_v10 = vpack.c.bf16 %v484_v48, %v480_v50  ;;  %v3882_v48 = vld [vmem:[%s5479_s5 + $0x3e0] ss:$8 sps:$4 sm:$0xff]   ;;  %v3885_v50 = vld [vmem:[%s5479_s5 + $0x2b0] ss:$8 sps:$4 sm:$0xff]  }
 0x10c   :  { %v390_v19 = vadd.f32 %v389_v16, %v4520_v39  ;;  %855 = vmatprep.mubr.bf16.mxu0 %v509_v9  ;;  %936 = vmatprep.mubr.bf16.mxu1 %v503_v11  ;;  %v459_v24 = vmax.f32 %v388_v12, 0.0 }
 0x10d   :  { %v391_v23 = vpop.f32.mrf.mxu1  ;;  %856 = vmatmul.mubr.bf16.gmra.mxu0 %v508_v4  ;;  %937 = vmatmul.mubr.bf16.gmra.mxu1 %v502_v14 }
 0x10e   :  { %v462_v25 = vmax.f32 %v390_v19, 0.0  ;;  %v392_v27 = vadd.f32 %v391_v23, %v4517_v36  ;;  %863 = vmatprep.mubr.bf16.mxu0 %v513_v17  ;;  %v3848_v23 = vld [vmem:[%s5479_s5 + $0x344] ss:$8 sps:$4 sm:$0xff]  }
 0x10f   :  { %v395_v28 = vpop.f32.mrf.mxu1  ;;  %1497 = vmatprep.subr.bf16.mxu1 %v3848_v23 }
 0x110   :  { %v463_v30 = vmax.f32 %v392_v27, 0.0  ;;  %v506_v32 = vpack.c.bf16 %v462_v25, %v458_v22  ;;  %v396_v58 = vadd.f32 %v395_v28, %v4520_v39  ;;  %v3845_v22 = vld [vmem:[%s5479_s5 + $0x224] ss:$8 sps:$4 sm:$0xff]   ;;  %v3851_v27 = vld [vmem:[%s5479_s5 + $0x214] ss:$8 sps:$4 sm:$0xff]  }
 0x111   :  { %v397_v33 = vpop.f32.mrf.mxu1  ;;  %1460 = vmatprep.subr.bf16.mxu0 %v3845_v22  ;;  %v3849_v28 = vld [vmem:[%s5479_s5 + $0x210] ss:$8 sps:$4 sm:$0xff]  }
 0x112   :  { %v507_v35 = vpack.c.bf16 %v463_v30, %v459_v24  ;;  %v398_v37 = vadd.f32 %v397_v33, %v4517_v36  ;;  %v466_v43 = vmax.f32 %v396_v58, 0.0  ;;  %v3846_v24 = vld [vmem:[%s5479_s5 + $0x340] ss:$8 sps:$4 sm:$0xff]   ;;  %v3857_v30 = vld [vmem:[%s5479_s5 + $0x204] ss:$8 sps:$4 sm:$0xff]  }
 0x113   :  { %v399_v15 = vpop.f32.mrf.mxu1  ;;  %1498 = vmatpush1.bf16.msra.mxu1 %v3846_v24  ;;  %v3858_v58 = vld [vmem:[%s5479_s5 + $0x320] ss:$8 sps:$4 sm:$0xff]   ;;  %v3863_v33 = vld [vmem:[%s5479_s5 + $0x2f4] ss:$8 sps:$4 sm:$0xff]  }
 0x114   :  { %v400_v41 = vadd.f32 %v399_v15, %v4520_v39  ;;  %944 = vmatprep.mubr.bf16.mxu1 %v507_v35  ;;  %v467_v45 = vmax.f32 %v398_v37, 0.0  ;;  %1499 = vmatprep.subr.bf16.mxu1 %v3854_v26  ;;  %v3861_v35 = vld [vmem:[%s5479_s5 + $0x2f0] ss:$8 sps:$4 sm:$0xff]   ;;  %v3867_v15 = vld [vmem:[%s5479_s5 + $0x2e0] ss:$8 sps:$4 sm:$0xff]  }
 0x115   :  { %v401_v44 = vpop.f32.mrf.mxu1  ;;  %864 = vmatmul.mubr.bf16.gmra.mxu0 %v512_v38  ;;  %945 = vmatmul.mubr.bf16.gmra.mxu1 %v506_v32  ;;  %v3855_v32 = vld [vmem:[%s5479_s5 + $0x200] ss:$8 sps:$4 sm:$0xff]   ;;  %v3864_v37 = vld [vmem:[%s5479_s5 + $0x310] ss:$8 sps:$4 sm:$0xff]   ;;  %v3869_v38 = vld [vmem:[%s5479_s5 + $0x2e4] ss:$8 sps:$4 sm:$0xff]  }
 0x116   :  { %v470_v46 = vmax.f32 %v400_v41, 0.0  ;;  %v402_v47 = vadd.f32 %v401_v44, %v4517_v36  ;;  %871 = vmatprep.mubr.bf16.mxu0 %v517_v40  ;;  %v3870_v40 = vld [vmem:[%s5479_s5 + $0x300] ss:$8 sps:$4 sm:$0xff]   ;;  %v3875_v41 = vld [vmem:[%s5479_s5 + $0x2d4] ss:$8 sps:$4 sm:$0xff]  }
 0x117   :  { %v405_v49 = vpop.f32.mrf.mxu1  ;;  %1500 = vmatpush1.bf16.msra.mxu1 %v3852_v29  ;;  %v3876_v44 = vld [vmem:[%s5479_s5 + $0x3f0] ss:$8 sps:$4 sm:$0xff]  }
 0x118   :  { %v471_v20 = vmax.f32 %v402_v47, 0.0  ;;  %v510_v5 = vpack.c.bf16 %v470_v46, %v466_v43  ;;  %v406_v51 = vadd.f32 %v405_v49, %v4520_v39  ;;  %1501 = vmatprep.subr.bf16.mxu1 %v3860_v31  ;;  %v3873_v43 = vld [vmem:[%s5479_s5 + $0x2d0] ss:$8 sps:$4 sm:$0xff]   ;;  %v3884_v46 = vld [vmem:[%s5479_s5 + $0x3e4] ss:$8 sps:$4 sm:$0xff]  }
 0x119   :  { %v407_v54 = vpop.f32.mrf.mxu1  ;;  %v3879_v47 = vld [vmem:[%s5479_s5 + $0x2c0] ss:$8 sps:$4 sm:$0xff]   ;;  %v3887_v49 = vld [vmem:[%s5479_s5 + $0x2b4] ss:$8 sps:$4 sm:$0xff]  }
 0x11a   :  { %v511_v57 = vpack.c.bf16 %v471_v20, %v467_v45  ;;  %v408_v56 = vadd.f32 %v407_v54, %v4517_v36  ;;  %v474_v63 = vmax.f32 %v406_v51, 0.0  ;;  %v3881_v45 = vld [vmem:[%s5479_s5 + $0x2c4] ss:$8 sps:$4 sm:$0xff]   ;;  %v3890_v20 = vld [vmem:[%s5479_s5 + $0x3d4] ss:$8 sps:$4 sm:$0xff]  }
 0x11b   :  { %v409_v60 = vpop.f32.mrf.mxu1  ;;  %1502 = vmatpush1.bf16.msra.mxu1 %v3858_v58  ;;  %v3893_v51 = vld [vmem:[%s5479_s5 + $0x2a4] ss:$8 sps:$4 sm:$0xff]  }
 0x11c   :  { %v410_v61 = vadd.f32 %v409_v60, %v4520_v39  ;;  %952 = vmatprep.mubr.bf16.mxu1 %v511_v57  ;;  %v475_v2 = vmax.f32 %v408_v56, 0.0  ;;  %1503 = vmatprep.subr.bf16.mxu1 %v3866_v34  ;;  %v3896_v54 = vld [vmem:[%s5479_s5 + $0x3c4] ss:$8 sps:$4 sm:$0xff]   ;;  %v3891_v57 = vld [vmem:[%s5479_s5 + $0x2a0] ss:$8 sps:$4 sm:$0xff]  }
 0x11d   :  { %v411_v0 = vpop.f32.mrf.mxu1  ;;  %872 = vmatmul.mubr.bf16.gmra.mxu0 %v516_v10  ;;  %953 = vmatmul.mubr.bf16.gmra.mxu1 %v510_v5  ;;  %v3888_v5 = vld [vmem:[%s5479_s5 + $0x3d0] ss:$8 sps:$4 sm:$0xff]   ;;  %v3894_v56 = vld [vmem:[%s5479_s5 + $0x3c0] ss:$8 sps:$4 sm:$0xff]   ;;  %v3899_v10 = vld [vmem:[%s5479_s5 + $0x294] ss:$8 sps:$4 sm:$0xff]  }
 0x11e   :  { %v478_v3 = vmax.f32 %v410_v61, 0.0  ;;  %v412_v62 = vadd.f32 %v411_v0, %v4517_v36  ;;  %v3902_v60 = vld [vmem:[%s5479_s5 + $0x3b4] ss:$8 sps:$4 sm:$0xff]   ;;  %v3897_v61 = vld [vmem:[%s5479_s5 + $0x290] ss:$8 sps:$4 sm:$0xff]  }
 0x11f   :  { %v415_v4 = vpop.f32.mrf.mxu1  ;;  %1504 = vmatpush1.bf16.msra.mxu1 %v3864_v37  ;;  %v3905_v0 = vld [vmem:[%s5479_s5 + $0x284] ss:$8 sps:$4 sm:$0xff]  }
 0x120   :  { %v479_v6 = vmax.f32 %v412_v62, 0.0  ;;  %v514_v7 = vpack.c.bf16 %v478_v3, %v474_v63  ;;  %v416_v8 = vadd.f32 %v415_v4, %v4520_v39  ;;  %1505 = vmatprep.subr.bf16.mxu1 %v3872_v59  ;;  %v3900_v63 = vld [vmem:[%s5479_s5 + $0x3b0] ss:$8 sps:$4 sm:$0xff]   ;;  %v3903_v3 = vld [vmem:[%s5479_s5 + $0x280] ss:$8 sps:$4 sm:$0xff]  }
 0x121   :  { %v417_v9 = vpop.f32.mrf.mxu1  ;;  %v3906_v62 = vld [vmem:[%s5479_s5 + $0x3a0] ss:$8 sps:$4 sm:$0xff]   ;;  %v3911_v4 = vld [vmem:[%s5479_s5 + $0x394] ss:$8 sps:$4 sm:$0xff]  }
 0x122   :  { %v515_v11 = vpack.c.bf16 %v479_v6, %v475_v2  ;;  %v418_v12 = vadd.f32 %v417_v9, %v4517_v36  ;;  %v482_v16 = vmax.f32 %v416_v8, 0.0  ;;  %v3908_v2 = vld [vmem:[%s5479_s5 + $0x3a4] ss:$8 sps:$4 sm:$0xff]   ;;  %v3914_v6 = vld [vmem:[%s5479_s5 + $0x74] ss:$8 sps:$4 sm:$0xff]  }
 0x123   :  { %v419_v13 = vpop.f32.mrf.mxu1  ;;  %1506 = vmatpush1.bf16.msra.mxu1 %v3870_v40  ;;  %v3917_v8 = vld [vmem:[%s5479_s5 + $0x384] ss:$8 sps:$4 sm:$0xff]   ;;  %v3915_v9 = vld [vmem:[%s5479_s5 + $0x380] ss:$8 sps:$4 sm:$0xff]  }
 0x124   :  { %v420_v14 = vadd.f32 %v419_v13, %v4520_v39  ;;  %960 = vmatprep.mubr.bf16.mxu1 %v515_v11  ;;  %v483_v18 = vmax.f32 %v418_v12, 0.0  ;;  %v3843_v39 = vld [vmem:[%s5479_s5 + $0x220] ss:$8 sps:$4 sm:$0xff]   ;;  %1507 = vmatprep.subr.bf16.mxu1 %v3878_v42  ;;  %v3926_v11 = vld [vmem:[%s5479_s5 + $0x174] ss:$8 sps:$4 sm:$0xff]  }
 0x125   :  { %v421_v17 = vpop.f32.mrf.mxu1  ;;  %961 = vmatmul.mubr.bf16.gmra.mxu1 %v514_v7  ;;  %1461 = vmatpush1.bf16.msra.mxu0 %v3843_v39  ;;  %v3909_v7 = vld [vmem:[%s5479_s5 + $0x390] ss:$8 sps:$4 sm:$0xff]   ;;  %v4768_v13 = vld [vmem:[%s5478_s4] ss:$0 sm:$0xff] }
 0x126   :  { %v486_v19 = vmax.f32 %v420_v14, 0.0  ;;  %v422_v21 = vadd.f32 %v421_v17, %v4517_v36  ;;  %1462 = vmatprep.subr.bf16.mxu0 %v3851_v27 }
 0x127   :  { %1508 = vmatpush2.bf16.msra.mxu1 %v3876_v44 }
 0x128   :  { %v487_v1 = vmax.f32 %v422_v21, 0.0  ;;  %v518_v25 = vpack.c.bf16 %v486_v19, %v482_v16  ;;  %1509 = vmatprep.subr.bf16.mxu1 %v3884_v46 }
 0x129   :  { %1463 = vmatpush1.bf16.msra.mxu0 %v3849_v28 }
 0x12a   :  { %v519_v36 = vpack.c.bf16 %v487_v1, %v483_v18  ;;  %1464 = vmatprep.subr.bf16.mxu0 %v3857_v30 }
 0x12b   :  { %1510 = vmatpush2.bf16.msra.mxu1 %v3882_v48 }
 0x12c   :  { %968 = vmatprep.mubr.bf16.mxu1 %v519_v36  ;;  %1511 = vmatprep.subr.bf16.mxu1 %v3890_v20 }
 0x12d   :  { %969 = vmatmul.mubr.bf16.gmra.mxu1 %v518_v25  ;;  %1465 = vmatpush1.bf16.msra.mxu0 %v3855_v32 }
 0x12e   :  { %1466 = vmatprep.subr.bf16.mxu0 %v3863_v33 }
 0x12f   :  { %1512 = vmatpush2.bf16.msra.mxu1 %v3888_v5 }
 0x130   :  { %1513 = vmatprep.subr.bf16.mxu1 %v3896_v54 }
 0x131   :  { %1467 = vmatpush2.bf16.msra.mxu0 %v3861_v35 }
 0x132   :  { %1468 = vmatprep.subr.bf16.mxu0 %v3869_v38 }
 0x133   :  { %1514 = vmatpush2.bf16.msra.mxu1 %v3894_v56 }
 0x134   :  { %1515 = vmatprep.subr.bf16.mxu1 %v3902_v60 }
 0x135   :  { %1469 = vmatpush2.bf16.msra.mxu0 %v3867_v15 }
 0x136   :  { %1470 = vmatprep.subr.bf16.mxu0 %v3875_v41 }
 0x137   :  { %1516 = vmatpush2.bf16.msra.mxu1 %v3900_v63 }
 0x138   :  { %1517 = vmatprep.subr.bf16.mxu1 %v3908_v2 }
 0x139   :  { %1471 = vmatpush2.bf16.msra.mxu0 %v3873_v43 }
 0x13a   :  { %1472 = vmatprep.subr.bf16.mxu0 %v3881_v45 }
 0x13b   :  { %1518 = vmatpush2.bf16.msra.mxu1 %v3906_v62 }
 0x13c   :  { %1519 = vmatprep.subr.bf16.mxu1 %v3911_v4 }
 0x13d   :  { %1473 = vmatpush2.bf16.msra.mxu0 %v3879_v47 }
 0x13e   :  { %1474 = vmatprep.subr.bf16.mxu0 %v3887_v49 }
 0x13f   :  { %1520 = vmatpush2.bf16.msra.mxu1 %v3909_v7 }
 0x140   :  { %1521 = vmatprep.subr.bf16.mxu1 %v3917_v8 }
 0x141   :  { %1475 = vmatpush2.bf16.msra.mxu0 %v3885_v50 }
 0x142   :  { %1476 = vmatprep.subr.bf16.mxu0 %v3893_v51 }
 0x143   :  { %1522 = vmatpush2.bf16.msra.mxu1 %v3915_v9 }
 0x144   :  { %1893 = vmatprep.subr.bf16.mxu1 %v3926_v11 }
 0x145   :  { %1477 = vmatpush2.bf16.msra.mxu0 %v3891_v57 }
 0x146   :  { %1478 = vmatprep.subr.bf16.mxu0 %v3899_v10 }
 0x149   :  { %1479 = vmatpush2.bf16.msra.mxu0 %v3897_v61 }
 0x14a   :  { %1480 = vmatprep.subr.bf16.mxu0 %v3905_v0 }
 0x14d   :  { %1481 = vmatpush2.bf16.msra.mxu0 %v3903_v3 }
 0x14e   :  { %1852 = vmatprep.subr.bf16.mxu0 %v3914_v6 }
 0x1a5   :  { %v3625_v12 = vpop.f32.mrf.mxu0 }
 0x1a7   :  { %v3626_v14 = vpop.f32.mrf.mxu0 }
 0x1a8   :  { %v3627_v16 = vadd.f32 %v3626_v14, %v3625_v12 }
 0x1a9   :  { %v3628_v17 = vpop.f32.mrf.mxu0 }
 0x1aa   :  { %v818_v18 = vadd.f32 %v3627_v16, %v4768_v13 }
 0x1ab   :  { %v3629_v19 = vpop.f32.mrf.mxu0 }
 0x1ac   :  { %v3630_v43 = vadd.f32 %v3629_v19, %v3628_v17 }
 0x1ad   :  { %v3631_v21 = vpop.f32.mrf.mxu0 }
 0x1ae   :  { %v821_v51 = vadd.f32 %v3630_v43, %v4768_v13  ;;  %v3923_v43 = vld [vmem:[%s5479_s5 + $0x54] ss:$8 sps:$4 sm:$0xff]  }
 0x1af   :  { %v3632_v22 = vpop.f32.mrf.mxu0 }
 0x1b0   :  { %v3633_v23 = vadd.f32 %v3632_v22, %v3631_v21 }
 0x1b1   :  { %v3634_v1 = vpop.f32.mrf.mxu0 }
 0x1b2   :  { %v826_v39 = vadd.f32 %v3633_v23, %v4768_v13 }
 0x1b3   :  { %v3635_v24 = vpop.f32.mrf.mxu0 }
 0x1b4   :  { %v3636_v8 = vadd.f32 %v3635_v24, %v3634_v1  ;;  %v3912_v1 = vld [vmem:[%s5479_s5 + $0x70] ss:$8 sps:$4 sm:$0xff]  }
 0x1b5   :  { %v3637_v25 = vpop.f32.mrf.mxu0  ;;  %v3689_v36 = vpop.f32.mrf.mxu1 }
 0x1b6   :  { %v829_v24 = vadd.f32 %v3636_v8, %v4768_v13 }
 0x1b7   :  { %v3638_v27 = vpop.f32.mrf.mxu0  ;;  %v3690_v26 = vpop.f32.mrf.mxu1 }
 0x1b8   :  { %v3691_v28 = vadd.f32 %v3690_v26, %v3689_v36  ;;  %v3639_v44 = vadd.f32 %v3638_v27, %v3637_v25 }
 0x1b9   :  { %v3640_v29 = vpop.f32.mrf.mxu0  ;;  %v3692_v30 = vpop.f32.mrf.mxu1 }
 0x1ba   :  { %v4772_v31 = vadd.f32 %v3691_v28, %v818_v18  ;;  %v834_v54 = vadd.f32 %v3639_v44, %v4768_v13 }
 0x1bb   :  { %v3641_v32 = vpop.f32.mrf.mxu0  ;;  %v3693_v58 = vpop.f32.mrf.mxu1 }
 0x1bc   :  { %v3694_v47 = vadd.f32 %v3693_v58, %v3692_v30  ;;  %v3642_v20 = vadd.f32 %v3641_v32, %v3640_v29  ;;  %v3920_v30 = vld [vmem:[%s5479_s5 + $0x64] ss:$8 sps:$4 sm:$0xff]  }
 0x1bd   :  { %v3643_v33 = vpop.f32.mrf.mxu0  ;;  %v3695_v34 = vpop.f32.mrf.mxu1 }
 0x1be   :  { %v918_v60 = vadd.f32 %v3694_v47, %v821_v51  ;;  %v837_v2 = vadd.f32 %v3642_v20, %v4768_v13  ;;  %v3921_v51 = vld [vmem:[%s5479_s5 + $0x50] ss:$8 sps:$4 sm:$0xff]  }
 0x1bf   :  { %v3644_v35 = vpop.f32.mrf.mxu0  ;;  %v3696_v37 = vpop.f32.mrf.mxu1 }
 0x1c0   :  { %v3697_v38 = vadd.f32 %v3696_v37, %v3695_v34  ;;  %v3645_v62 = vadd.f32 %v3644_v35, %v3643_v33  ;;  %v978_v9 = vmax.f32 %v918_v60, 0.0 }
 0x1c1   :  { %v3646_v59 = vpop.f32.mrf.mxu0  ;;  %v3698_v15 = vpop.f32.mrf.mxu1 }
 0x1c2   :  { %v4774_v40 = vadd.f32 %v3697_v38, %v826_v39  ;;  %v842_v21 = vadd.f32 %v3645_v62, %v4768_v13  ;;  %v994_v32 = vpack.c.bf16 %v978_v9, %v978_v9  ;;  %v3935_v9 = vld [vmem:[%s5479_s5 + $0x34] ss:$8 sps:$4 sm:$0xff]  }
 0x1c3   :  { %v3647_v41 = vpop.f32.mrf.mxu0  ;;  %v3699_v42 = vpop.f32.mrf.mxu1 }
 0x1c4   :  { %v3648_v16 = vadd.f32 %v3647_v41, %v3646_v59  ;;  %v3700_v22 = vadd.f32 %v3699_v42, %v3698_v15  ;;  %v3918_v59 = vld [vmem:[%s5479_s5 + $0x60] ss:$8 sps:$4 sm:$0xff]  }
 0x1c5   :  { %v3649_v45 = vpop.f32.mrf.mxu0  ;;  %v3701_v46 = vpop.f32.mrf.mxu1 }
 0x1c6   :  { %v845_v58 = vadd.f32 %v3648_v16, %v4768_v13  ;;  %v926_v34 = vadd.f32 %v3700_v22, %v829_v24  ;;  %v3942_v24 = vld [vmem:[%s5479_s5 + $0x140] ss:$8 sps:$4 sm:$0xff]  }
 0x1c7   :  { %v3650_v48 = vpop.f32.mrf.mxu0  ;;  %v3702_v49 = vpop.f32.mrf.mxu1 }
 0x1c8   :  { %v3651_v50 = vadd.f32 %v3650_v48, %v3649_v45  ;;  %v3703_v5 = vadd.f32 %v3702_v49, %v3701_v46  ;;  %v980_v47 = vmax.f32 %v926_v34, 0.0  ;;  %v3948_v34 = vld [vmem:[%s5479_s5 + $0x130] ss:$8 sps:$4 sm:$0xff]  }
 0x1c9   :  { %v4778_v57 = vpop.f32.mrf.mxu0  ;;  %v3704_v56 = vpop.f32.mrf.mxu1 }
 0x1ca   :  { %v850_v10 = vadd.f32 %v3651_v50, %v4768_v13  ;;  %v931_v61 = vadd.f32 %v3703_v5, %v834_v54  ;;  %v3924_v54 = vld [vmem:[%s5479_s5 + $0x170] ss:$8 sps:$4 sm:$0xff]  }
 0x1cb   :  { %v4781_v63 = vpop.f32.mrf.mxu0  ;;  %v3705_v0 = vpop.f32.mrf.mxu1 }
 0x1cc   :  { %v3706_v3 = vadd.f32 %v3705_v0, %v3704_v56  ;;  %v981_v11 = vmax.f32 %v931_v61, 0.0  ;;  %v3932_v0 = vld [vmem:[%s5479_s5 + $0x164] ss:$8 sps:$4 sm:$0xff]  }
 0x1cd   :  { %v3655_v4 = vpop.f32.mrf.mxu0  ;;  %v3707_v6 = vpop.f32.mrf.mxu1 }
 0x1ce   :  { %v934_v7 = vadd.f32 %v3706_v3, %v837_v2  ;;  %v1061_v27 = vpack.c.bf16 %v981_v11, %v981_v11  ;;  %v996_v2 = vpack.c.bf16 %v980_v47, %v980_v47  ;;  %v3938_v11 = vld [vmem:[%s5479_s5 + $0x154] ss:$8 sps:$4 sm:$0xff]   ;;  %v3957_v47 = vld [vmem:[%s5479_s5 + $0xf0] ss:$8 sps:$4 sm:$0xff]  }
 0x1cf   :  { %v3656_v12 = vpop.f32.mrf.mxu0  ;;  %v3708_v14 = vpop.f32.mrf.mxu1 }
 0x1d0   :  { %v982_v17 = vmax.f32 %v934_v7, 0.0  ;;  %v3657_v18 = vadd.f32 %v3656_v12, %v3655_v4  ;;  %v3709_v19 = vadd.f32 %v3708_v14, %v3707_v6  ;;  %v3927_v4 = vld [vmem:[%s5479_s5 + $0x40] ss:$8 sps:$4 sm:$0xff]  }
 0x1d1   :  { %v4785_v23 = vpop.f32.mrf.mxu0  ;;  %v3710_v39 = vpop.f32.mrf.mxu1  ;;  %v3930_v6 = vld [vmem:[%s5479_s5 + $0x160] ss:$8 sps:$4 sm:$0xff]  }
 0x1d2   :  { %v1062_v25 = vpack.c.bf16 %v982_v17, %v982_v17  ;;  %v4788_v36 = vadd.f32 %v3657_v18, %v4768_v13  ;;  %v939_v26 = vadd.f32 %v3709_v19, %v842_v21  ;;  %v3933_v19 = vld [vmem:[%s5479_s5 + $0x30] ss:$8 sps:$4 sm:$0xff]  }
 0x1d3   :  { %v4794_v28 = vpop.f32.mrf.mxu0  ;;  %v3711_v29 = vpop.f32.mrf.mxu1  ;;  %v3936_v21 = vld [vmem:[%s5479_s5 + $0x150] ss:$8 sps:$4 sm:$0xff]  }
 0x1d4   :  { %v3712_v33 = vadd.f32 %v3711_v29, %v3710_v39  ;;  %1482 = vmatprep.mubr.bf16.mxu0 %v1062_v25  ;;  %v983_v15 = vmax.f32 %v939_v26, 0.0  ;;  %v3941_v39 = vld [vmem:[%s5479_s5 + $0x24] ss:$8 sps:$4 sm:$0xff]   ;;  %v3947_v26 = vld [vmem:[%s5479_s5 + $0x14] ss:$8 sps:$4 sm:$0xff]  }
 0x1d5   :  { %v3661_v35 = vpop.f32.mrf.mxu0  ;;  %v3713_v37 = vpop.f32.mrf.mxu1  ;;  %1483 = vmatmul.mubr.bf16.vlgmr.msra.gmra.mxu0 %v1061_v27  ;;  %v3944_v25 = vld [vmem:[%s5479_s5 + $0x144] ss:$8 sps:$4 sm:$0xff]   ;;  %v3950_v29 = vld [vmem:[%s5479_s5 + $0x134] ss:$8 sps:$4 sm:$0xff]  }
 0x1d6   :  { %v942_v38 = vadd.f32 %v3712_v33, %v845_v58  ;;  %1853 = vmatpush1.bf16.msra.mxu0 %v3912_v1  ;;  %1884 = vmatprep.mubr.bf16.mxu0 %v994_v32  ;;  %v1063_v56 = vpack.c.bf16 %v983_v15, %v983_v15  ;;  %v3939_v1 = vld [vmem:[%s5479_s5 + $0x20] ss:$8 sps:$4 sm:$0xff]   ;;  %v3945_v33 = vld [vmem:[%s5479_s5 + $0x10] ss:$8 sps:$4 sm:$0xff]  }
 0x1d7   :  { %v3662_v41 = vpop.f32.mrf.mxu0  ;;  %v3714_v42 = vpop.f32.mrf.mxu1  ;;  %1854 = vmatprep.subr.bf16.mxu0 %v3920_v30  ;;  %v3951_v15 = vld [vmem:[%s5479_s5] ss:$8 sps:$4 sm:$0xff]  }
 0x1d8   :  { %v984_v44 = vmax.f32 %v942_v38, 0.0  ;;  %v3663_v45 = vadd.f32 %v3662_v41, %v3661_v35  ;;  %v3715_v46 = vadd.f32 %v3714_v42, %v3713_v37  ;;  %v3953_v37 = vld [vmem:[%s5479_s5 + $0x4] ss:$8 sps:$4 sm:$0xff]   ;;  %v3954_v41 = vld [vmem:[%s5479_s5 + $0x120] ss:$8 sps:$4 sm:$0xff]  }
 0x1d9   :  { %v4806_v48 = vpop.f32.mrf.mxu0  ;;  %v4808_v49 = vpop.f32.mrf.mxu1  ;;  %v3956_v38 = vld [vmem:[%s5479_s5 + $0x124] ss:$8 sps:$4 sm:$0xff]  }
 0x1da   :  { %v1064_v20 = vpack.c.bf16 %v984_v44, %v984_v44  ;;  %v866_v50 = vadd.f32 %v3663_v45, %v4768_v13  ;;  %v4811_v5 = vadd.f32 %v3715_v46, %v850_v10  ;;  %1855 = vmatpush1.bf16.msra.mxu0 %v3918_v59  ;;  %v3929_v10 = vld [vmem:[%s5479_s5 + $0x44] ss:$8 sps:$4 sm:$0xff]   ;;  %v3962_v44 = vld [vmem:[%s5479_s5 + $0x114] ss:$8 sps:$4 sm:$0xff]  }
 0x1db   :  { %v4819_v60 = vpop.f32.mrf.mxu0  ;;  %v4821_v61 = vpop.f32.mrf.mxu1  ;;  %1856 = vmatprep.subr.bf16.mxu0 %v3923_v43  ;;  %v3959_v43 = vld [vmem:[%s5479_s5 + $0xf4] ss:$8 sps:$4 sm:$0xff]  }
 0x1dc   :  { %1523 = vmatprep.mubr.bf16.mxu1 %v1064_v20  ;;  %v3960_v20 = vld [vmem:[%s5479_s5 + $0x110] ss:$8 sps:$4 sm:$0xff]  }
 0x1dd   :  { %v3667_v3 = vpop.f32.mrf.mxu0  ;;  %v3719_v62 = vpop.f32.mrf.mxu1  ;;  %1524 = vmatmul.mubr.bf16.vlgmr.msra.gmra.mxu1 %v1063_v56  ;;  %v3966_v56 = vld [vmem:[%s5479_s5 + $0x100] ss:$8 sps:$4 sm:$0xff]  }
 0x1de   :  { %1857 = vmatpush1.bf16.msra.mxu0 %v3921_v51  ;;  %1894 = vmatpush1.bf16.msra.mxu1 %v3924_v54  ;;  %v3968_v51 = vld [vmem:[%s5479_s5 + $0x104] ss:$8 sps:$4 sm:$0xff]   ;;  %v3963_v54 = vld [vmem:[%s5479_s5 + $0xe0] ss:$8 sps:$4 sm:$0xff]  }
 0x1df   :  { %1925 = vmatprep.mubr.bf16.mxu1 %v996_v2  ;;  %v3668_v7 = vpop.f32.mrf.mxu0  ;;  %v3720_v8 = vpop.f32.mrf.mxu1  ;;  %1858 = vmatprep.subr.bf16.mxu0 %v3929_v10  ;;  %v3971_v10 = vld [vmem:[%s5479_s5 + $0xd4] ss:$8 sps:$4 sm:$0xff]   ;;  %v3969_v2 = vld [vmem:[%s5479_s5 + $0xd0] ss:$8 sps:$4 sm:$0xff]  }
 0x1e0   :  { %v3669_v12 = vadd.f32 %v3668_v7, %v3667_v3  ;;  %v3721_v14 = vadd.f32 %v3720_v8, %v3719_v62  ;;  %1895 = vmatprep.subr.bf16.mxu1 %v3932_v0  ;;  %v3974_v0 = vld [vmem:[%s5479_s5 + $0x1f4] ss:$8 sps:$4 sm:$0xff]   ;;  %v3972_v3 = vld [vmem:[%s5479_s5 + $0x1f0] ss:$8 sps:$4 sm:$0xff]   ;;  %v3977_v62 = vld [vmem:[%s5479_s5 + $0xc4] ss:$8 sps:$4 sm:$0xff]  }
 0x1e1   :  { %v4841_v16 = vpop.f32.mrf.mxu1  ;;  %v3978_v7 = vld [vmem:[%s5479_s5 + $0x1e0] ss:$8 sps:$4 sm:$0xff]   ;;  %v3983_v8 = vld [vmem:[%s5479_s5 + $0xb4] ss:$8 sps:$4 sm:$0xff]  }
 0x1e2   :  { %v874_v17 = vadd.f32 %v3669_v12, %v4768_v13  ;;  %v4845_v18 = vadd.f32 %v3721_v14, %v4788_v36  ;;  %1859 = vmatpush1.bf16.msra.mxu0 %v3927_v4  ;;  %1896 = vmatpush1.bf16.msra.mxu1 %v3930_v6  ;;  %v3980_v4 = vld [vmem:[%s5479_s5 + $0x1e4] ss:$8 sps:$4 sm:$0xff]   ;;  %v3975_v6 = vld [vmem:[%s5479_s5 + $0xc0] ss:$8 sps:$4 sm:$0xff]   ;;  %v3984_v12 = vld [vmem:[%s5479_s5 + $0x1d0] ss:$8 sps:$4 sm:$0xff]  }
 0x1e3   :  { %v4853_v22 = vpop.f32.mrf.mxu1  ;;  %1860 = vmatprep.subr.bf16.mxu0 %v3935_v9  ;;  %1897 = vmatprep.subr.bf16.mxu1 %v3938_v11  ;;  %v3986_v9 = vld [vmem:[%s5479_s5 + $0x1d4] ss:$8 sps:$4 sm:$0xff]   ;;  %v3981_v11 = vld [vmem:[%s5479_s5 + $0xb0] ss:$8 sps:$4 sm:$0xff]   ;;  %v3989_v14 = vld [vmem:[%s5479_s5 + $0xa4] ss:$8 sps:$4 sm:$0xff]  }
 0x1e5   :  { %v3725_v36 = vpop.f32.mrf.mxu1 }
 0x1e6   :  { %1861 = vmatpush1.bf16.msra.mxu0 %v3933_v19  ;;  %1898 = vmatpush1.bf16.msra.mxu1 %v3936_v21  ;;  %v3654_v19 = vadd.f32 %v4781_v63, %v4778_v57  ;;  %v3987_v21 = vld [vmem:[%s5479_s5 + $0xa0] ss:$8 sps:$4 sm:$0xff]   ;;  %v3998_v57 = vld [vmem:[%s5479_s5 + $0x1b4] ss:$8 sps:$4 sm:$0xff]  }
 0x1e7   :  { %v3726_v27 = vpop.f32.mrf.mxu1  ;;  %1862 = vmatprep.subr.bf16.mxu0 %v3941_v39  ;;  %1899 = vmatprep.subr.bf16.mxu1 %v3944_v25  ;;  %v3990_v39 = vld [vmem:[%s5479_s5 + $0x1c0] ss:$8 sps:$4 sm:$0xff]   ;;  %v3995_v25 = vld [vmem:[%s5479_s5 + $0x94] ss:$8 sps:$4 sm:$0xff]  }
 0x1e8   :  { %v3727_v30 = vadd.f32 %v3726_v27, %v3725_v36  ;;  %v853_v63 = vadd.f32 %v3654_v19, %v4768_v13  ;;  %v3718_v36 = vadd.f32 %v4821_v61, %v4808_v49  ;;  %v4001_v27 = vld [vmem:[%s5479_s5 + $0x84] ss:$8 sps:$4 sm:$0xff]   ;;  %v3660_v61 = vadd.f32 %v4794_v28, %v4785_v23  ;;  %v4010_v23 = vld [vmem:[%s5479_s5 + $0x474] ss:$8 sps:$4 sm:$0xff]   ;;  %v4041_v19 = vld [vmem:[%s5479_s5 + $0x410] ss:$8 sps:$4 sm:$0xff]  }
 0x1e9   :  { %v4873_v32 = vpop.f32.mrf.mxu1  ;;  %v4004_v49 = vld [vmem:[%s5479_s5 + $0x1a4] ss:$8 sps:$4 sm:$0xff]  }
 0x1ea   :  { %v4875_v58 = vadd.f32 %v3727_v30, %v866_v50  ;;  %1863 = vmatpush1.bf16.msra.mxu0 %v3939_v1  ;;  %1900 = vmatpush1.bf16.msra.mxu1 %v3942_v24  ;;  %v3965_v50 = vld [vmem:[%s5479_s5 + $0xe4] ss:$8 sps:$4 sm:$0xff]   ;;  %v3993_v1 = vld [vmem:[%s5479_s5 + $0x90] ss:$8 sps:$4 sm:$0xff]   ;;  %v4002_v30 = vld [vmem:[%s5479_s5 + $0x1a0] ss:$8 sps:$4 sm:$0xff]   ;;  %v861_v28 = vadd.f32 %v3660_v61, %v4768_v13 }
 0x1eb   :  { %v4883_v35 = vpop.f32.mrf.mxu1  ;;  %1864 = vmatprep.subr.bf16.mxu0 %v3947_v26  ;;  %1901 = vmatprep.subr.bf16.mxu1 %v3950_v29  ;;  %v3996_v24 = vld [vmem:[%s5479_s5 + $0x1b0] ss:$8 sps:$4 sm:$0xff]   ;;  %v950_v26 = vadd.f32 %v3718_v36, %v853_v63  ;;  %v3999_v29 = vld [vmem:[%s5479_s5 + $0x80] ss:$8 sps:$4 sm:$0xff]   ;;  %v4055_v36 = vld [vmem:[%s5479_s5 + $0x4f4] ss:$8 sps:$4 sm:$0xff]  }
 0x1ec   :  { %v4050_v63 = vld [vmem:[%s5479_s5 + $0x520] ss:$8 sps:$4 sm:$0xff]   ;;  %v4064_v61 = vld [vmem:[%s5479_s5 + $0x504] ss:$8 sps:$4 sm:$0xff]  }
 0x1ed   :  { %v3731_v59 = vpop.f32.mrf.mxu1 }
 0x1ee   :  { %1865 = vmatpush1.bf16.msra.mxu0 %v3945_v33  ;;  %1902 = vmatpush1.bf16.msra.mxu1 %v3948_v34  ;;  %v977_v33 = vmax.f32 %v4772_v31, 0.0  ;;  %v4007_v34 = vld [vmem:[%s5479_s5 + $0x194] ss:$8 sps:$4 sm:$0xff]   ;;  %v4005_v31 = vld [vmem:[%s5479_s5 + $0x190] ss:$8 sps:$4 sm:$0xff]  }
 0x1ef   :  { %v3732_v42 = vpop.f32.mrf.mxu1  ;;  %1866 = vmatprep.subr.bf16.mxu0 %v3953_v37  ;;  %1903 = vmatprep.subr.bf16.mxu1 %v3956_v38  ;;  %v986_v37 = vmax.f32 %v950_v26, 0.0  ;;  %v3724_v38 = vadd.f32 %v4853_v22, %v4841_v16  ;;  %v4016_v16 = vld [vmem:[%s5479_s5 + $0x464] ss:$8 sps:$4 sm:$0xff]   ;;  %v4059_v26 = vld [vmem:[%s5479_s5 + $0x4e0] ss:$8 sps:$4 sm:$0xff]  }
 0x1f0   :  { %v3733_v45 = vadd.f32 %v3732_v42, %v3731_v59  ;;  %v4008_v59 = vld [vmem:[%s5479_s5 + $0x470] ss:$8 sps:$4 sm:$0xff]  }
 0x1f1   :  { %v1935_v22 = vpack.c.bf16 %v986_v37, %v986_v37  ;;  %v958_v42 = vadd.f32 %v3724_v38, %v861_v28  ;;  %v4073_v28 = vld [vmem:[%s5479_s5 + $0x4c4] ss:$8 sps:$4 sm:$0xff]   ;;  %v4071_v38 = vld [vmem:[%s5479_s5 + $0x4c0] ss:$8 sps:$4 sm:$0xff]  }
 0x1f2   :  { %v4903_v46 = vadd.f32 %v3733_v45, %v874_v17  ;;  %1867 = vmatpush1.bf16.msra.mxu0 %v3951_v15  ;;  %1904 = vmatpush1.bf16.msra.mxu1 %v3954_v41  ;;  %v3992_v17 = vld [vmem:[%s5479_s5 + $0x1c4] ss:$8 sps:$4 sm:$0xff]   ;;  %v993_v15 = vpack.c.bf16 %v977_v33, %v977_v33  ;;  %v979_v45 = vmax.f32 %v4774_v40, 0.0  ;;  %v4020_v40 = vld [vmem:[%s5479_s5 + $0x570] ss:$8 sps:$4 sm:$0xff]  }
 0x1f3   :  { %1868 = vmatprep.subr.bf16.mxu0 %v3959_v43  ;;  %1905 = vmatprep.subr.bf16.mxu1 %v3962_v44  ;;  %v4013_v41 = vld [vmem:[%s5479_s5 + $0x184] ss:$8 sps:$4 sm:$0xff]   ;;  %v4011_v43 = vld [vmem:[%s5479_s5 + $0x180] ss:$8 sps:$4 sm:$0xff]   ;;  %v4070_v33 = vld [vmem:[%s5479_s5 + $0x5f4] ss:$8 sps:$4 sm:$0xff]  }
 0x1f4   :  { %v4014_v44 = vld [vmem:[%s5479_s5 + $0x460] ss:$8 sps:$4 sm:$0xff]   ;;  %v4076_v37 = vld [vmem:[%s5479_s5 + $0x5e4] ss:$8 sps:$4 sm:$0xff]  }
 0x1f6   :  { %1869 = vmatpush2.bf16.msra.mxu0 %v3957_v47  ;;  %1906 = vmatpush1.bf16.msra.mxu1 %v3960_v20  ;;  %v4019_v47 = vld [vmem:[%s5479_s5 + $0x454] ss:$8 sps:$4 sm:$0xff]  }
 0x1f7   :  { %1870 = vmatprep.subr.bf16.mxu0 %v3965_v50  ;;  %1907 = vmatprep.subr.bf16.mxu1 %v3968_v51  ;;  %v4022_v20 = vld [vmem:[%s5479_s5 + $0x574] ss:$8 sps:$4 sm:$0xff]   ;;  %v988_v50 = vmax.f32 %v958_v42, 0.0  ;;  %v4017_v51 = vld [vmem:[%s5479_s5 + $0x450] ss:$8 sps:$4 sm:$0xff]  }
 0x1f8   :  { %v4088_v42 = vld [vmem:[%s5479_s5 + $0x5c4] ss:$8 sps:$4 sm:$0xff]  }
 0x1fa   :  { %1871 = vmatpush2.bf16.msra.mxu0 %v3963_v54  ;;  %1908 = vmatpush1.bf16.msra.mxu1 %v3966_v56  ;;  %v995_v54 = vpack.c.bf16 %v979_v45, %v979_v45  ;;  %v4025_v56 = vld [vmem:[%s5479_s5 + $0x444] ss:$8 sps:$4 sm:$0xff]   ;;  %v3666_v45 = vadd.f32 %v4819_v60, %v4806_v48  ;;  %v4089_v48 = vld [vmem:[%s5479_s5 + $0x490] ss:$8 sps:$4 sm:$0xff]  }
 0x1fb   :  { %1872 = vmatprep.subr.bf16.mxu0 %v3971_v10  ;;  %1909 = vmatprep.subr.bf16.mxu1 %v3974_v0  ;;  %v4028_v10 = vld [vmem:[%s5479_s5 + $0x564] ss:$8 sps:$4 sm:$0xff]   ;;  %v1937_v0 = vpack.c.bf16 %v988_v50, %v988_v50  ;;  %v3670_v50 = vpop.f32.mrf.mxu0  ;;  %v4092_v60 = vld [vmem:[%s5479_s5 + $0x5b0] ss:$8 sps:$4 sm:$0xff]  }
 0x1fe   :  { %1873 = vmatpush2.bf16.msra.mxu0 %v3969_v2  ;;  %1910 = vmatpush2.bf16.msra.mxu1 %v3972_v3  ;;  %v4023_v2 = vld [vmem:[%s5479_s5 + $0x440] ss:$8 sps:$4 sm:$0xff]  }
 0x1ff   :  { %1874 = vmatprep.subr.bf16.mxu0 %v3977_v62  ;;  %1911 = vmatprep.subr.bf16.mxu1 %v3980_v4  ;;  %v4026_v3 = vld [vmem:[%s5479_s5 + $0x560] ss:$8 sps:$4 sm:$0xff]   ;;  %v4031_v62 = vld [vmem:[%s5479_s5 + $0x434] ss:$8 sps:$4 sm:$0xff]  }
 0x200   :  { %v4034_v4 = vld [vmem:[%s5479_s5 + $0x554] ss:$8 sps:$4 sm:$0xff]  }
 0x202   :  { %1875 = vmatpush2.bf16.msra.mxu0 %v3975_v6  ;;  %1912 = vmatpush2.bf16.msra.mxu1 %v3978_v7  ;;  %v4029_v6 = vld [vmem:[%s5479_s5 + $0x430] ss:$8 sps:$4 sm:$0xff]  }
 0x203   :  { %1876 = vmatprep.subr.bf16.mxu0 %v3983_v8  ;;  %1913 = vmatprep.subr.bf16.mxu1 %v3986_v9  ;;  %v4032_v7 = vld [vmem:[%s5479_s5 + $0x550] ss:$8 sps:$4 sm:$0xff]   ;;  %v4037_v8 = vld [vmem:[%s5479_s5 + $0x424] ss:$8 sps:$4 sm:$0xff]  }
 0x204   :  { %v4040_v9 = vld [vmem:[%s5479_s5 + $0x544] ss:$8 sps:$4 sm:$0xff]  }
 0x206   :  { %1877 = vmatpush2.bf16.msra.mxu0 %v3981_v11  ;;  %1914 = vmatpush2.bf16.msra.mxu1 %v3984_v12  ;;  %v4035_v11 = vld [vmem:[%s5479_s5 + $0x420] ss:$8 sps:$4 sm:$0xff]  }
 0x207   :  { %1878 = vmatprep.subr.bf16.mxu0 %v3989_v14  ;;  %1915 = vmatprep.subr.bf16.mxu1 %v3992_v17  ;;  %v4038_v12 = vld [vmem:[%s5479_s5 + $0x540] ss:$8 sps:$4 sm:$0xff]   ;;  %v4043_v14 = vld [vmem:[%s5479_s5 + $0x414] ss:$8 sps:$4 sm:$0xff]  }
 0x208   :  { %v4046_v17 = vld [vmem:[%s5479_s5 + $0x534] ss:$8 sps:$4 sm:$0xff]  }
 0x20a   :  { %1879 = vmatpush2.bf16.msra.mxu0 %v3987_v21  ;;  %1916 = vmatpush2.bf16.msra.mxu1 %v3990_v39  ;;  %v4044_v21 = vld [vmem:[%s5479_s5 + $0x530] ss:$8 sps:$4 sm:$0xff]   ;;  %v4049_v39 = vld [vmem:[%s5479_s5 + $0x404] ss:$8 sps:$4 sm:$0xff]  }
 0x20b   :  { %1880 = vmatprep.subr.bf16.mxu0 %v3995_v25  ;;  %1917 = vmatprep.subr.bf16.mxu1 %v3998_v57  ;;  %v4052_v25 = vld [vmem:[%s5479_s5 + $0x524] ss:$8 sps:$4 sm:$0xff]   ;;  %v4047_v57 = vld [vmem:[%s5479_s5 + $0x400] ss:$8 sps:$4 sm:$0xff]  }
 0x20e   :  { %1881 = vmatpush2.bf16.msra.mxu0 %v3993_v1  ;;  %1918 = vmatpush2.bf16.msra.mxu1 %v3996_v24  ;;  %v4058_v1 = vld [vmem:[%s5479_s5 + $0x514] ss:$8 sps:$4 sm:$0xff]   ;;  %v4053_v24 = vld [vmem:[%s5479_s5 + $0x4f0] ss:$8 sps:$4 sm:$0xff]  }
 0x20f   :  { %1882 = vmatprep.subr.bf16.mxu0 %v4001_v27  ;;  %1919 = vmatprep.subr.bf16.mxu1 %v4004_v49  ;;  %v4056_v27 = vld [vmem:[%s5479_s5 + $0x510] ss:$8 sps:$4 sm:$0xff]   ;;  %v4061_v49 = vld [vmem:[%s5479_s5 + $0x4e4] ss:$8 sps:$4 sm:$0xff]  }
 0x212   :  { %1883 = vmatpush2.bf16.msra.mxu0 %v3999_v29  ;;  %1920 = vmatpush2.bf16.msra.mxu1 %v4002_v30  ;;  %v4062_v29 = vld [vmem:[%s5479_s5 + $0x500] ss:$8 sps:$4 sm:$0xff]   ;;  %v4067_v30 = vld [vmem:[%s5479_s5 + $0x4d4] ss:$8 sps:$4 sm:$0xff]  }
 0x213   :  { %1921 = vmatprep.subr.bf16.mxu1 %v4007_v34  ;;  %2323 = vmatprep.subr.bf16.mxu0 %v4010_v23  ;;  %v4065_v34 = vld [vmem:[%s5479_s5 + $0x4d0] ss:$8 sps:$4 sm:$0xff]  }
 0x214   :  { %v4068_v23 = vld [vmem:[%s5479_s5 + $0x5f0] ss:$8 sps:$4 sm:$0xff]  }
 0x215   :  { %1885 = vmatmul.mubr.bf16.vlgmr.msra.gmra.mxu0 %v993_v15  ;;  %v4082_v15 = vld [vmem:[%s5479_s5 + $0x5d4] ss:$8 sps:$4 sm:$0xff]  }
 0x216   :  { %1922 = vmatpush2.bf16.msra.mxu1 %v4005_v31  ;;  %2324 = vmatpush1.bf16.msra.mxu0 %v4008_v59  ;;  %v4074_v31 = vld [vmem:[%s5479_s5 + $0x5e0] ss:$8 sps:$4 sm:$0xff]   ;;  %v4079_v59 = vld [vmem:[%s5479_s5 + $0x4b4] ss:$8 sps:$4 sm:$0xff]  }
 0x217   :  { %1923 = vmatprep.subr.bf16.mxu1 %v4013_v41  ;;  %2325 = vmatprep.subr.bf16.mxu0 %v4016_v16  ;;  %v4077_v41 = vld [vmem:[%s5479_s5 + $0x4b0] ss:$8 sps:$4 sm:$0xff]  }
 0x218   :  { %2355 = vmatprep.mubr.bf16.mxu0 %v1935_v22  ;;  %v4080_v16 = vld [vmem:[%s5479_s5 + $0x5d0] ss:$8 sps:$4 sm:$0xff]   ;;  %v4085_v22 = vld [vmem:[%s5479_s5 + $0x4a4] ss:$8 sps:$4 sm:$0xff]  }
 0x21a   :  { %1924 = vmatpush2.bf16.msra.mxu1 %v4011_v43  ;;  %2326 = vmatpush1.bf16.msra.mxu0 %v4014_v44  ;;  %v4083_v43 = vld [vmem:[%s5479_s5 + $0x4a0] ss:$8 sps:$4 sm:$0xff]  }
 0x21b   :  { %2327 = vmatprep.subr.bf16.mxu0 %v4019_v47  ;;  %2364 = vmatprep.subr.bf16.mxu1 %v4022_v20  ;;  %v4086_v44 = vld [vmem:[%s5479_s5 + $0x5c0] ss:$8 sps:$4 sm:$0xff]   ;;  %v4091_v47 = vld [vmem:[%s5479_s5 + $0x494] ss:$8 sps:$4 sm:$0xff]  }
 0x21c   :  { %v4094_v20 = vld [vmem:[%s5479_s5 + $0x5b4] ss:$8 sps:$4 sm:$0xff]  }
 0x21d   :  { %1926 = vmatmul.mubr.bf16.vlgmr.msra.gmra.mxu1 %v995_v54  ;;  %v869_v54 = vadd.f32 %v3666_v45, %v4768_v13  ;;  %v4146_v45 = vld [vmem:[%s5479_s5 + $0x720] ss:$8 sps:$4 sm:$0xff]  }
 0x21e   :  { %2328 = vmatpush1.bf16.msra.mxu0 %v4017_v51  ;;  %2365 = vmatpush1.bf16.msra.mxu1 %v4020_v40  ;;  %v3730_v51 = vadd.f32 %v4883_v35, %v4873_v32  ;;  %v3734_v40 = vpop.f32.mrf.mxu1  ;;  %v4100_v32 = vld [vmem:[%s5479_s5 + $0x5a4] ss:$8 sps:$4 sm:$0xff]   ;;  %v3671_v35 = vpop.f32.mrf.mxu0 }
 0x21f   :  { %2329 = vmatprep.subr.bf16.mxu0 %v4025_v56  ;;  %2366 = vmatprep.subr.bf16.mxu1 %v4028_v10  ;;  %v4097_v56 = vld [vmem:[%s5479_s5 + $0x484] ss:$8 sps:$4 sm:$0xff]  }
 0x220   :  { %2396 = vmatprep.mubr.bf16.mxu1 %v1937_v0  ;;  %v966_v10 = vadd.f32 %v3730_v51, %v869_v54  ;;  %v3735_v0 = vpop.f32.mrf.mxu1  ;;  %v4152_v51 = vld [vmem:[%s5479_s5 + $0x710] ss:$8 sps:$4 sm:$0xff]   ;;  %v4158_v54 = vld [vmem:[%s5479_s5 + $0x700] ss:$8 sps:$4 sm:$0xff]  }
 0x222   :  { %2330 = vmatpush1.bf16.msra.mxu0 %v4023_v2  ;;  %2367 = vmatpush1.bf16.msra.mxu1 %v4026_v3  ;;  %v4095_v2 = vld [vmem:[%s5479_s5 + $0x480] ss:$8 sps:$4 sm:$0xff]  }
 0x223   :  { %2331 = vmatprep.subr.bf16.mxu0 %v4031_v62  ;;  %2368 = vmatprep.subr.bf16.mxu1 %v4034_v4  ;;  %v4098_v3 = vld [vmem:[%s5479_s5 + $0x5a0] ss:$8 sps:$4 sm:$0xff]   ;;  %v985_v62 = vmax.f32 %v4811_v5, 0.0  ;;  %v3672_v4 = vadd.f32 %v3671_v35, %v3670_v50  ;;  %v4104_v5 = vld [vmem:[%s5479_s5 + $0x670] ss:$8 sps:$4 sm:$0xff]  }
 0x224   :  { %v4149_v50 = vld [vmem:[%s5479_s5 + $0x6f0] ss:$8 sps:$4 sm:$0xff]  }
 0x225   :  { %v4161_v35 = vld [vmem:[%s5479_s5 + $0x6d0] ss:$8 sps:$4 sm:$0xff]  }
 0x226   :  { %2332 = vmatpush1.bf16.msra.mxu0 %v4029_v6  ;;  %2369 = vmatpush1.bf16.msra.mxu1 %v4032_v7  ;;  %v4103_v6 = vld [vmem:[%s5479_s5 + $0x594] ss:$8 sps:$4 sm:$0xff]  }
 0x227   :  { %2333 = vmatprep.subr.bf16.mxu0 %v4037_v8  ;;  %2370 = vmatprep.subr.bf16.mxu1 %v4040_v9  ;;  %v4106_v7 = vld [vmem:[%s5479_s5 + $0x674] ss:$8 sps:$4 sm:$0xff]   ;;  %v990_v8 = vmax.f32 %v966_v10, 0.0  ;;  %v3736_v9 = vadd.f32 %v3735_v0, %v3734_v40  ;;  %v4157_v40 = vld [vmem:[%s5479_s5 + $0x6e4] ss:$8 sps:$4 sm:$0xff]  }
 0x228   :  { %v4164_v10 = vld [vmem:[%s5479_s5 + $0x7f0] ss:$8 sps:$4 sm:$0xff]   ;;  %v4169_v0 = vld [vmem:[%s5479_s5 + $0x6c4] ss:$8 sps:$4 sm:$0xff]  }
 0x22a   :  { %2334 = vmatpush1.bf16.msra.mxu0 %v4035_v11  ;;  %2371 = vmatpush1.bf16.msra.mxu1 %v4038_v12  ;;  %v4101_v11 = vld [vmem:[%s5479_s5 + $0x590] ss:$8 sps:$4 sm:$0xff]   ;;  %v1934_v12 = vpack.c.bf16 %v985_v62, %v985_v62  ;;  %v4170_v62 = vld [vmem:[%s5479_s5 + $0x7e0] ss:$8 sps:$4 sm:$0xff]  }
 0x22b   :  { %2335 = vmatprep.subr.bf16.mxu0 %v4043_v14  ;;  %2372 = vmatprep.subr.bf16.mxu1 %v4046_v17  ;;  %v877_v14 = vadd.f32 %v3672_v4, %v4768_v13  ;;  %v4109_v17 = vld [vmem:[%s5479_s5 + $0x584] ss:$8 sps:$4 sm:$0xff]   ;;  %v4110_v13 = vld [vmem:[%s5479_s5 + $0x660] ss:$8 sps:$4 sm:$0xff]   ;;  %v4175_v4 = vld [vmem:[%s5479_s5 + $0x6b4] ss:$8 sps:$4 sm:$0xff]  }
 0x22e   :  { %2336 = vmatpush1.bf16.msra.mxu0 %v4041_v19  ;;  %2373 = vmatpush1.bf16.msra.mxu1 %v4044_v21  ;;  %v4112_v19 = vld [vmem:[%s5479_s5 + $0x664] ss:$8 sps:$4 sm:$0xff]   ;;  %v2408_v21 = vpack.c.bf16 %v990_v8, %v990_v8  ;;  %v4176_v8 = vld [vmem:[%s5479_s5 + $0x7d0] ss:$8 sps:$4 sm:$0xff]  }
 0x22f   :  { %2337 = vmatprep.subr.bf16.mxu0 %v4049_v39  ;;  %2374 = vmatprep.subr.bf16.mxu1 %v4052_v25  ;;  %v974_v39 = vadd.f32 %v3736_v9, %v877_v14  ;;  %v4107_v25 = vld [vmem:[%s5479_s5 + $0x580] ss:$8 sps:$4 sm:$0xff]   ;;  %v4181_v9 = vld [vmem:[%s5479_s5 + $0x6a4] ss:$8 sps:$4 sm:$0xff]   ;;  %v4187_v14 = vld [vmem:[%s5479_s5 + $0x694] ss:$8 sps:$4 sm:$0xff]  }
 0x232   :  { %2338 = vmatpush1.bf16.msra.mxu0 %v4047_v57  ;;  %2375 = vmatpush1.bf16.msra.mxu1 %v4050_v63  ;;  %v987_v57 = vmax.f32 %v4845_v18, 0.0  ;;  %v4115_v63 = vld [vmem:[%s5479_s5 + $0x654] ss:$8 sps:$4 sm:$0xff]   ;;  %v4116_v18 = vld [vmem:[%s5479_s5 + $0x770] ss:$8 sps:$4 sm:$0xff]  }
 0x233   :  { %2339 = vmatprep.subr.bf16.mxu0 %v4055_v36  ;;  %2376 = vmatprep.subr.bf16.mxu1 %v4058_v1  ;;  %v4118_v36 = vld [vmem:[%s5479_s5 + $0x774] ss:$8 sps:$4 sm:$0xff]   ;;  %v992_v1 = vmax.f32 %v974_v39, 0.0  ;;  %v4193_v39 = vld [vmem:[%s5479_s5 + $0x684] ss:$8 sps:$4 sm:$0xff]  }
 0x236   :  { %2340 = vmatpush2.bf16.msra.mxu0 %v4053_v24  ;;  %2377 = vmatpush1.bf16.msra.mxu1 %v4056_v27  ;;  %v4113_v24 = vld [vmem:[%s5479_s5 + $0x650] ss:$8 sps:$4 sm:$0xff]   ;;  %v1936_v27 = vpack.c.bf16 %v987_v57, %v987_v57  ;;  %v4194_v57 = vld [vmem:[%s5479_s5 + $0x7a0] ss:$8 sps:$4 sm:$0xff]  }
 0x237   :  { %2341 = vmatprep.subr.bf16.mxu0 %v4061_v49  ;;  %2378 = vmatprep.subr.bf16.mxu1 %v4064_v61  ;;  %v4121_v49 = vld [vmem:[%s5479_s5 + $0x644] ss:$8 sps:$4 sm:$0xff]  }
 0x238   :  { %v4124_v61 = vld [vmem:[%s5479_s5 + $0x764] ss:$8 sps:$4 sm:$0xff]  }
 0x23a   :  { %2342 = vmatpush2.bf16.msra.mxu0 %v4059_v26  ;;  %2379 = vmatpush1.bf16.msra.mxu1 %v4062_v29  ;;  %v2410_v26 = vpack.c.bf16 %v992_v1, %v992_v1  ;;  %v4119_v29 = vld [vmem:[%s5479_s5 + $0x640] ss:$8 sps:$4 sm:$0xff]   ;;  %v4197_v1 = vld [vmem:[%s5479_s5 + $0x790] ss:$8 sps:$4 sm:$0xff]  }
 0x23b   :  { %2343 = vmatprep.subr.bf16.mxu0 %v4067_v30  ;;  %2380 = vmatprep.subr.bf16.mxu1 %v4070_v33  ;;  %v4122_v30 = vld [vmem:[%s5479_s5 + $0x760] ss:$8 sps:$4 sm:$0xff]   ;;  %v4127_v33 = vld [vmem:[%s5479_s5 + $0x634] ss:$8 sps:$4 sm:$0xff]  }
 0x23e   :  { %2344 = vmatpush2.bf16.msra.mxu0 %v4065_v34  ;;  %2381 = vmatpush2.bf16.msra.mxu1 %v4068_v23  ;;  %v4130_v34 = vld [vmem:[%s5479_s5 + $0x754] ss:$8 sps:$4 sm:$0xff]   ;;  %v4125_v23 = vld [vmem:[%s5479_s5 + $0x630] ss:$8 sps:$4 sm:$0xff]  }
 0x23f   :  { %2345 = vmatprep.subr.bf16.mxu0 %v4073_v28  ;;  %2382 = vmatprep.subr.bf16.mxu1 %v4076_v37  ;;  %v4128_v28 = vld [vmem:[%s5479_s5 + $0x750] ss:$8 sps:$4 sm:$0xff]   ;;  %v4133_v37 = vld [vmem:[%s5479_s5 + $0x624] ss:$8 sps:$4 sm:$0xff]  }
 0x242   :  { %2346 = vmatpush2.bf16.msra.mxu0 %v4071_v38  ;;  %2383 = vmatpush2.bf16.msra.mxu1 %v4074_v31  ;;  %v4136_v38 = vld [vmem:[%s5479_s5 + $0x744] ss:$8 sps:$4 sm:$0xff]   ;;  %v4131_v31 = vld [vmem:[%s5479_s5 + $0x620] ss:$8 sps:$4 sm:$0xff]  }
 0x243   :  { %2347 = vmatprep.subr.bf16.mxu0 %v4079_v59  ;;  %2384 = vmatprep.subr.bf16.mxu1 %v4082_v15  ;;  %v4134_v59 = vld [vmem:[%s5479_s5 + $0x740] ss:$8 sps:$4 sm:$0xff]   ;;  %v4139_v15 = vld [vmem:[%s5479_s5 + $0x614] ss:$8 sps:$4 sm:$0xff]  }
 0x246   :  { %2348 = vmatpush2.bf16.msra.mxu0 %v4077_v41  ;;  %2385 = vmatpush2.bf16.msra.mxu1 %v4080_v16  ;;  %v4142_v41 = vld [vmem:[%s5479_s5 + $0x734] ss:$8 sps:$4 sm:$0xff]   ;;  %v4137_v16 = vld [vmem:[%s5479_s5 + $0x610] ss:$8 sps:$4 sm:$0xff]  }
 0x247   :  { %2349 = vmatprep.subr.bf16.mxu0 %v4085_v22  ;;  %2386 = vmatprep.subr.bf16.mxu1 %v4088_v42  ;;  %v4140_v22 = vld [vmem:[%s5479_s5 + $0x730] ss:$8 sps:$4 sm:$0xff]   ;;  %v4145_v42 = vld [vmem:[%s5479_s5 + $0x604] ss:$8 sps:$4 sm:$0xff]  }
 0x24a   :  { %2350 = vmatpush2.bf16.msra.mxu0 %v4083_v43  ;;  %2387 = vmatpush2.bf16.msra.mxu1 %v4086_v44  ;;  %v4148_v43 = vld [vmem:[%s5479_s5 + $0x724] ss:$8 sps:$4 sm:$0xff]   ;;  %v4143_v44 = vld [vmem:[%s5479_s5 + $0x600] ss:$8 sps:$4 sm:$0xff]  }
 0x24b   :  { %2351 = vmatprep.subr.bf16.mxu0 %v4091_v47  ;;  %2388 = vmatprep.subr.bf16.mxu1 %v4094_v20  ;;  %v4151_v47 = vld [vmem:[%s5479_s5 + $0x6f4] ss:$8 sps:$4 sm:$0xff]  }
 0x24c   :  { %v4154_v20 = vld [vmem:[%s5479_s5 + $0x714] ss:$8 sps:$4 sm:$0xff]  }
 0x24e   :  { %2352 = vmatpush2.bf16.msra.mxu0 %v4089_v48  ;;  %2389 = vmatpush2.bf16.msra.mxu1 %v4092_v60  ;;  %v4160_v48 = vld [vmem:[%s5479_s5 + $0x704] ss:$8 sps:$4 sm:$0xff]   ;;  %v4155_v60 = vld [vmem:[%s5479_s5 + $0x6e0] ss:$8 sps:$4 sm:$0xff]  }
 0x24f   :  { %2353 = vmatprep.subr.bf16.mxu0 %v4097_v56  ;;  %2390 = vmatprep.subr.bf16.mxu1 %v4100_v32  ;;  %v4163_v56 = vld [vmem:[%s5479_s5 + $0x6d4] ss:$8 sps:$4 sm:$0xff]  }
 0x250   :  { %v4166_v32 = vld [vmem:[%s5479_s5 + $0x7f4] ss:$8 sps:$4 sm:$0xff]  }
 0x252   :  { %2354 = vmatpush2.bf16.msra.mxu0 %v4095_v2  ;;  %2391 = vmatpush2.bf16.msra.mxu1 %v4098_v3  ;;  %v4172_v2 = vld [vmem:[%s5479_s5 + $0x7e4] ss:$8 sps:$4 sm:$0xff]   ;;  %v4167_v3 = vld [vmem:[%s5479_s5 + $0x6c0] ss:$8 sps:$4 sm:$0xff]  }
 0x253   :  { %2392 = vmatprep.subr.bf16.mxu1 %v4103_v6  ;;  %2796 = vmatprep.subr.bf16.mxu0 %v4106_v7  ;;  %v4178_v6 = vld [vmem:[%s5479_s5 + $0x7d4] ss:$8 sps:$4 sm:$0xff]   ;;  %v4173_v7 = vld [vmem:[%s5479_s5 + $0x6b0] ss:$8 sps:$4 sm:$0xff]  }
 0x255   :  { %2356 = vmatmul.mubr.bf16.vlgmr.msra.gmra.mxu0 %v1934_v12  ;;  %v4182_v12 = vld [vmem:[%s5479_s5 + $0x7c0] ss:$8 sps:$4 sm:$0xff]  }
 0x256   :  { %2393 = vmatpush2.bf16.msra.mxu1 %v4101_v11  ;;  %2797 = vmatpush1.bf16.msra.mxu0 %v4104_v5  ;;  %v4184_v11 = vld [vmem:[%s5479_s5 + $0x7c4] ss:$8 sps:$4 sm:$0xff]   ;;  %v4179_v5 = vld [vmem:[%s5479_s5 + $0x6a0] ss:$8 sps:$4 sm:$0xff]  }
 0x257   :  { %2828 = vmatprep.mubr.bf16.mxu0 %v2408_v21  ;;  %2394 = vmatprep.subr.bf16.mxu1 %v4109_v17  ;;  %v4190_v17 = vld [vmem:[%s5479_s5 + $0x7b4] ss:$8 sps:$4 sm:$0xff]   ;;  %v4188_v21 = vld [vmem:[%s5479_s5 + $0x7b0] ss:$8 sps:$4 sm:$0xff]  }
 0x258   :  { %2798 = vmatprep.subr.bf16.mxu0 %v4112_v19  ;;  %v4185_v19 = vld [vmem:[%s5479_s5 + $0x690] ss:$8 sps:$4 sm:$0xff]  }
 0x25a   :  { %2395 = vmatpush2.bf16.msra.mxu1 %v4107_v25  ;;  %2799 = vmatpush1.bf16.msra.mxu0 %v4110_v13  ;;  %v4196_v25 = vld [vmem:[%s5479_s5 + $0x7a4] ss:$8 sps:$4 sm:$0xff]   ;;  %v4191_v13 = vld [vmem:[%s5479_s5 + $0x680] ss:$8 sps:$4 sm:$0xff]  }
 0x25b   :  { %2800 = vmatprep.subr.bf16.mxu0 %v4115_v63  ;;  %2837 = vmatprep.subr.bf16.mxu1 %v4118_v36  ;;  %v989_v63 = vmax.f32 %v4875_v58, 0.0  ;;  %v4199_v36 = vld [vmem:[%s5479_s5 + $0x794] ss:$8 sps:$4 sm:$0xff]  }
 0x25d   :  { %2397 = vmatmul.mubr.bf16.vlgmr.msra.gmra.mxu1 %v1936_v27  ;;  %v4200_v27 = vld [vmem:[%s5479_s5 + $0x780] ss:$8 sps:$4 sm:$0xff]  }
 0x25e   :  { %2801 = vmatpush1.bf16.msra.mxu0 %v4113_v24  ;;  %2838 = vmatpush1.bf16.msra.mxu1 %v4116_v18  ;;  %v2407_v24 = vpack.c.bf16 %v989_v63, %v989_v63  ;;  %v4202_v18 = vld [vmem:[%s5479_s5 + $0x784] ss:$8 sps:$4 sm:$0xff]  }
 0x25f   :  { %2869 = vmatprep.mubr.bf16.mxu1 %v2410_v26  ;;  %2802 = vmatprep.subr.bf16.mxu0 %v4121_v49  ;;  %v991_v49 = vmax.f32 %v4903_v46, 0.0  ;;  %v4204_v46 = vld [vmem:[%s5481_s7 + $0x38] sm:$0xff]  }
 0x260   :  { %2839 = vmatprep.subr.bf16.mxu1 %v4124_v61 }
 0x262   :  { %2803 = vmatpush1.bf16.msra.mxu0 %v4119_v29  ;;  %2840 = vmatpush1.bf16.msra.mxu1 %v4122_v30  ;;  %v2409_v29 = vpack.c.bf16 %v991_v49, %v991_v49 }
 0x263   :  { %2804 = vmatprep.subr.bf16.mxu0 %v4127_v33  ;;  %2841 = vmatprep.subr.bf16.mxu1 %v4130_v34 }
 0x266   :  { %2805 = vmatpush1.bf16.msra.mxu0 %v4125_v23  ;;  %2842 = vmatpush1.bf16.msra.mxu1 %v4128_v28 }
 0x267   :  { %2806 = vmatprep.subr.bf16.mxu0 %v4133_v37  ;;  %2843 = vmatprep.subr.bf16.mxu1 %v4136_v38 }
 0x26a   :  { %2807 = vmatpush1.bf16.msra.mxu0 %v4131_v31  ;;  %2844 = vmatpush1.bf16.msra.mxu1 %v4134_v59  ;;  %v4203_v31 = vld [vmem:[%s5481_s7 + $0x78] sm:$0xff]   ;;  %v4205_v59 = vld [vmem:[%s5481_s7 + $0x70] sm:$0xff]  }
 0x26b   :  { %2808 = vmatprep.subr.bf16.mxu0 %v4139_v15  ;;  %2845 = vmatprep.subr.bf16.mxu1 %v4142_v41  ;;  %v4206_v15 = vld [vmem:[%s5481_s7 + $0x30] sm:$0xff]   ;;  %v4207_v41 = vld [vmem:[%s5481_s7 + $0x68] sm:$0xff]  }
 0x26e   :  { %2809 = vmatpush1.bf16.msra.mxu0 %v4137_v16  ;;  %2846 = vmatpush1.bf16.msra.mxu1 %v4140_v22  ;;  %v4208_v16 = vld [vmem:[%s5481_s7 + $0x28] sm:$0xff]  }
 0x26f   :  { %2810 = vmatprep.subr.bf16.mxu0 %v4145_v42  ;;  %2847 = vmatprep.subr.bf16.mxu1 %v4148_v43  ;;  %v4209_v43 = vld [vmem:[%s5481_s7 + $0x60] sm:$0xff]  }
 0x272   :  { %2811 = vmatpush1.bf16.msra.mxu0 %v4143_v44  ;;  %2848 = vmatpush1.bf16.msra.mxu1 %v4146_v45  ;;  %v4210_v45 = vld [vmem:[%s5481_s7 + $0x20] sm:$0xff]  }
 0x273   :  { %2812 = vmatprep.subr.bf16.mxu0 %v4151_v47  ;;  %2849 = vmatprep.subr.bf16.mxu1 %v4154_v20 }
 0x276   :  { %2813 = vmatpush2.bf16.msra.mxu0 %v4149_v50  ;;  %2850 = vmatpush1.bf16.msra.mxu1 %v4152_v51  ;;  %v4211_v50 = vld [vmem:[%s5481_s7 + $0x58] sm:$0xff]  }
 0x277   :  { %2814 = vmatprep.subr.bf16.mxu0 %v4157_v40  ;;  %2851 = vmatprep.subr.bf16.mxu1 %v4160_v48  ;;  %v4212_v40 = vld [vmem:[%s5481_s7 + $0x18] sm:$0xff]  }
 0x27a   :  { %2815 = vmatpush2.bf16.msra.mxu0 %v4155_v60  ;;  %2852 = vmatpush1.bf16.msra.mxu1 %v4158_v54  ;;  %v4213_v54 = vld [vmem:[%s5481_s7 + $0x50] sm:$0xff]  }
 0x27b   :  { %2816 = vmatprep.subr.bf16.mxu0 %v4163_v56  ;;  %2853 = vmatprep.subr.bf16.mxu1 %v4166_v32  ;;  %v4214_v32 = vld [vmem:[%s5481_s7 + $0x10] sm:$0xff]  }
 0x27e   :  { %2817 = vmatpush2.bf16.msra.mxu0 %v4161_v35  ;;  %2854 = vmatpush2.bf16.msra.mxu1 %v4164_v10 }
 0x27f   :  { %2818 = vmatprep.subr.bf16.mxu0 %v4169_v0  ;;  %2855 = vmatprep.subr.bf16.mxu1 %v4172_v2  ;;  %v4215_v0 = vld [vmem:[%s5481_s7 + $0x48] sm:$0xff]  }
 0x282   :  { %2819 = vmatpush2.bf16.msra.mxu0 %v4167_v3  ;;  %2856 = vmatpush2.bf16.msra.mxu1 %v4170_v62  ;;  %v4216_v3 = vld [vmem:[%s5481_s7 + $0x8] sm:$0xff]   ;;  %v4217_v62 = vld [vmem:[%s5481_s7 + $0x40] sm:$0xff]  }
 0x283   :  { %2820 = vmatprep.subr.bf16.mxu0 %v4175_v4  ;;  %2857 = vmatprep.subr.bf16.mxu1 %v4178_v6  ;;  %v4218_v4 = vld [vmem:[%s5481_s7] sm:$0xff]  }
 0x286   :  { %2821 = vmatpush2.bf16.msra.mxu0 %v4173_v7  ;;  %2858 = vmatpush2.bf16.msra.mxu1 %v4176_v8 }
 0x287   :  { %2822 = vmatprep.subr.bf16.mxu0 %v4181_v9  ;;  %2859 = vmatprep.subr.bf16.mxu1 %v4184_v11 }
 0x28a   :  { %2823 = vmatpush2.bf16.msra.mxu0 %v4179_v5  ;;  %2860 = vmatpush2.bf16.msra.mxu1 %v4182_v12 }
 0x28b   :  { %2824 = vmatprep.subr.bf16.mxu0 %v4187_v14  ;;  %2861 = vmatprep.subr.bf16.mxu1 %v4190_v17 }
 0x28e   :  { %2825 = vmatpush2.bf16.msra.mxu0 %v4185_v19  ;;  %2862 = vmatpush2.bf16.msra.mxu1 %v4188_v21 }
 0x28f   :  { %2826 = vmatprep.subr.bf16.mxu0 %v4193_v39  ;;  %2863 = vmatprep.subr.bf16.mxu1 %v4196_v25 }
 0x292   :  { %2827 = vmatpush2.bf16.msra.mxu0 %v4191_v13  ;;  %2864 = vmatpush2.bf16.msra.mxu1 %v4194_v57 }
 0x293   :  { %2865 = vmatprep.subr.bf16.mxu1 %v4199_v36  ;;  %3737 = vmatprep.subr.bf16.mxu0 %v4203_v31  ;;  %v2880_v36 = vld [vmem:[%s5480_s6] sm:$0x3] }
 0x295   :  { %2829 = vmatmul.mubr.bf16.vlgmr.msra.gmra.mxu0 %v2407_v24  ;;  %v1484_v58 = vpop.f32.mrf.mxu0 }
 0x296   :  { %2866 = vmatpush2.bf16.msra.mxu1 %v4197_v1  ;;  %3738 = vmatpush3.bf16.msra.mxu0 %v4204_v46 }
 0x297   :  { %v1486_v61 = vpop.f32.mrf.mxu0  ;;  %2867 = vmatprep.subr.bf16.mxu1 %v4202_v18  ;;  %3739 = vmatprep.subr.bf16.mxu0 %v4205_v59  ;;  %v2885_v18 = vrot.slane %v2880_v36, %v75_v53  ;;  %v3592_v53 = vld [vmem:[%s5482_s8] ss:$0 sm:$0xff] }
 0x299   :  { %v1488_v26 = vpop.f32.mrf.mxu0 }
 0x29a   :  { %2868 = vmatpush2.bf16.msra.mxu1 %v4200_v27  ;;  %3740 = vmatpush3.bf16.msra.mxu0 %v4206_v15 }
 0x29b   :  { %v1489_v30 = vpop.f32.mrf.mxu0  ;;  %3741 = vmatprep.subr.bf16.mxu0 %v4207_v41 }
 0x29d   :  { %2870 = vmatmul.mubr.bf16.vlgmr.msra.gmra.mxu1 %v2409_v29  ;;  %v1525_v33 = vpop.f32.mrf.mxu1 }
 0x29e   :  { %v1526_v34 = vadd.f32 %v1525_v33, %v1484_v58  ;;  %3742 = vmatpush3.bf16.msra.mxu0 %v4208_v16 }
 0x29f   :  { %v1527_v23 = vpop.f32.mrf.mxu1  ;;  %3743 = vmatprep.subr.bf16.mxu0 %v4209_v43 }
 0x2a0   :  { %v1528_v28 = vadd.f32 %v1527_v23, %v1486_v61  ;;  %v2889_v61 = vrot.slane %v2880_v36, %v79_v55 }
 0x2a1   :  { %v1529_v37 = vpop.f32.mrf.mxu1 }
 0x2a2   :  { %3744 = vmatpush3.bf16.msra.mxu0 %v4210_v45 }
 0x2a3   :  { %v1530_v38 = vpop.f32.mrf.mxu1  ;;  %3745 = vmatprep.subr.bf16.mxu0 %v4211_v50 }
 0x2a6   :  { %3746 = vmatpush3.bf16.msra.mxu0 %v4212_v40 }
 0x2a7   :  { %3747 = vmatprep.subr.bf16.mxu0 %v4213_v54 }
 0x2aa   :  { %3748 = vmatpush3.bf16.msra.mxu0 %v4214_v32 }
 0x2ab   :  { %3749 = vmatprep.subr.bf16.mxu0 %v4215_v0 }
 0x2ae   :  { %3750 = vmatpush3.bf16.msra.mxu0 %v4216_v3 }
 0x2af   :  { %3751 = vmatprep.subr.bf16.mxu0 %v4217_v62 }
 0x2b2   :  { %3752 = vmatpush3.bf16.msra.mxu0 %v4218_v4 }
 0x2d5   :  { %v1886_v22 = vpop.f32.mrf.mxu0 }
 0x2d6   :  { %v1887_v42 = vadd.f32 %v1886_v22, %v1526_v34 }
 0x2d7   :  { %v1888_v44 = vpop.f32.mrf.mxu0 }
 0x2d8   :  { %v1889_v47 = vadd.f32 %v1888_v44, %v1528_v28 }
 0x2d9   :  { %v1890_v20 = vpop.f32.mrf.mxu0 }
 0x2db   :  { %v1891_v51 = vpop.f32.mrf.mxu0 }
 0x2dd   :  { %v1927_v48 = vpop.f32.mrf.mxu1 }
 0x2de   :  { %v1928_v60 = vadd.f32 %v1927_v48, %v1887_v42 }
 0x2df   :  { %v1929_v56 = vpop.f32.mrf.mxu1 }
 0x2e0   :  { %v1930_v35 = vadd.f32 %v1929_v56, %v1889_v47 }
 0x2e1   :  { %v1931_v10 = vpop.f32.mrf.mxu1 }
 0x2e3   :  { %v1932_v2 = vpop.f32.mrf.mxu1 }
 0x315   :  { %v2357_v6 = vpop.f32.mrf.mxu0 }
 0x317   :  { %v2359_v7 = vpop.f32.mrf.mxu0 }
 0x319   :  { %v2361_v8 = vpop.f32.mrf.mxu0 }
 0x31b   :  { %v2362_v9 = vpop.f32.mrf.mxu0 }
 0x31d   :  { %v2398_v11 = vpop.f32.mrf.mxu1 }
 0x31e   :  { %v2399_v5 = vadd.f32 %v2398_v11, %v2357_v6 }
 0x31f   :  { %v2400_v12 = vpop.f32.mrf.mxu1 }
 0x320   :  { %v2405_v14 = vadd.f32 %v2399_v5, %v1928_v60  ;;  %v2401_v17 = vadd.f32 %v2400_v12, %v2359_v7 }
 0x321   :  { %v2402_v19 = vpop.f32.mrf.mxu1 }
 0x322   :  { %v2406_v21 = vadd.f32 %v2401_v17, %v1930_v35 }
 0x323   :  { %v2403_v39 = vpop.f32.mrf.mxu1 }
 0x355   :  { %v2830_v25 = vpop.f32.mrf.mxu0 }
 0x357   :  { %v2832_v13 = vpop.f32.mrf.mxu0 }
 0x359   :  { %v2834_v57 = vpop.f32.mrf.mxu0 }
 0x35b   :  { %v2835_v63 = vpop.f32.mrf.mxu0 }
 0x35d   :  { %v2871_v1 = vpop.f32.mrf.mxu1 }
 0x35e   :  { %v2872_v24 = vadd.f32 %v2871_v1, %v2830_v25 }
 0x35f   :  { %v2873_v58 = vpop.f32.mrf.mxu1 }
 0x360   :  { %v2878_v27 = vadd.f32 %v2872_v24, %v2405_v14  ;;  %v2874_v49 = vadd.f32 %v2873_v58, %v2832_v13 }
 0x361   :  { %v2875_v26 = vpop.f32.mrf.mxu1 }
 0x362   :  { %v2892_v29 = vadd.f32 %v2885_v18, %v2878_v27  ;;  %v2879_v30 = vadd.f32 %v2874_v49, %v2406_v21 }
 0x363   :  { %v2876_v33 = vpop.f32.mrf.mxu1 }
 0x364   :  { %v2893_v34 = vadd.f32 %v2889_v61, %v2879_v30  ;;  %v2894_v23 = vmax.f32 %v2892_v29, 0.0 }
 0x366   :  { %v2895_v28 = vmax.f32 %v2893_v34, 0.0  ;;  %v2896_v38 = vpack.c.bf16 %v2894_v23, %v2894_v23 }
 0x368   :  { %v2897_v37 = vpack.c.bf16 %v2895_v28, %v2895_v28 }
 0x36a   :  { %3065 = vmatprep.mubr.bf16.mxu0 %v2897_v37 }
 0x36b   :  { %3066 = vmatmul.mubr.bf16.vlgmr.msra.gmra.mxu0 %v2896_v38 }
 0x42b   :  { %v3753_v31 = vpop.f32.mrf.mxu0 }
 0x42d   :  { %v3754_v46 = vpop.f32.mrf.mxu0 }
 0x42e   :  { %v3755_v59 = vadd.f32 %v3754_v46, %v3753_v31 }
 0x42f   :  { %v3756_v52 = vpop.f32.mrf.mxu0 }
 0x430   :  { %v3068_v55 = vadd.f32 %v3755_v59, %v3592_v53 }
 0x431   :  { %v3757_v15 = vpop.f32.mrf.mxu0 }
 0x432   :  { %3073 = vst [vmem:[%s5483_s9] sm:$0xff] %v3068_v55 }
 0x433   :  { %3078 = vsyncpa [#allocation3], 1 }

</bundles_post_ra>
